<compile_context>
chip_gen: v5e
topology: v5e:2x2
jax: 0.10.0
libtpu: 0.0.40
codegen_flags: <defaults>
</compile_context>

<pallas_src>
import functools

import jax
import jax.numpy as jnp
from jax.experimental import pallas as pl
from jax.experimental.pallas import tpu as pltpu

LANE = 128


def _round_up(n, m=LANE):
    return ((n + m - 1) // m) * m


# ------------------------------ fused kernel --------------------------------


def make_forward_kernel(t_len, hp, depths, n_cluster):
    """One kernel = whole TSEncoder forward for a single batch element."""

    def shift_down(u, d):
        # result[t] = u[t - d], zero-filled for t < d  (same-pad left context)
        return jnp.concatenate(
            [jnp.zeros((d, hp), u.dtype), u[: t_len - d, :]], axis=0)

    def shift_up(u, d):
        # result[t] = u[t + d], zero-filled for t >= T - d
        return jnp.concatenate(
            [u[d:, :], jnp.zeros((d, hp), u.dtype)], axis=0)

    def kernel(x_ref, fcw, fcb, c1w, c1b, c2w, c2b, pw, pb,
               rw1, rb1, rw2, rb2, cw1, cb1, cw2, cb2, r_ref, p_ref):
        # --- input_fc with NaN-row zeroing (mask == 'all_true' in eval) ---
        x = x_ref[0]                                           # (T, Din_p) f32
        row_ok = jnp.logical_not(jnp.any(jnp.isnan(x), axis=-1, keepdims=True))
        x = jnp.where(row_ok, x, 0.0)
        h = jnp.dot(x.astype(jnp.bfloat16), fcw[...],
                    preferred_element_type=jnp.float32) + fcb[...]
        h = jnp.where(row_ok, h, 0.0)                          # (T, Hp) f32

        # --- dilated conv: 3 x (K=128) matmuls + output time-shifts ---
        def dconv(g_b, w_ref, b_ref, blk, d):
            base = 3 * blk
            u0 = jnp.dot(g_b, w_ref[base + 0], preferred_element_type=jnp.float32)
            u1 = jnp.dot(g_b, w_ref[base + 1], preferred_element_type=jnp.float32)
            u2 = jnp.dot(g_b, w_ref[base + 2], preferred_element_type=jnp.float32)
            return shift_down(u0, d) + u1 + shift_up(u2, d) + b_ref[blk]

        # --- residual tower, fully unrolled, h stays resident ---
        blk = 0
        for gi, depth in enumerate(depths):
            h_group_in = h
            for bi in range(depth):
                d = 2 ** bi
                res = h
                g = jax.nn.gelu(h, approximate=True).astype(jnp.bfloat16)
                u = dconv(g, c1w, c1b, blk, d)
                g2 = jax.nn.gelu(u, approximate=True).astype(jnp.bfloat16)
                y = dconv(g2, c2w, c2b, blk, d)
                if bi == depth - 1:      # final ConvBlock: 1x1 conv projector
                    res = jnp.dot(res.astype(jnp.bfloat16), pw[gi],
                                  preferred_element_type=jnp.float32) + pb[gi]
                h = y + res
                blk += 1
            h = h + h_group_in           # outer layer-group residual
            # repr_dropout(p=0.1) is identity in eval mode.

        # --- repr head: linear -> relu -> linear ---
        hb = h.astype(jnp.bfloat16)
        a = jnp.dot(hb, rw1[...], preferred_element_type=jnp.float32) + rb1[...]
        a = jnp.maximum(a, 0.0)
        r = jnp.dot(a.astype(jnp.bfloat16), rw2[...],
                    preferred_element_type=jnp.float32) + rb2[...]
        r_ref[0] = r.astype(r_ref.dtype)

        # --- cluster head: time-max (on resident h) -> MLP -> masked softmax ---
        z = jnp.max(h, axis=0, keepdims=True)                  # (1, Hp)
        a2 = jnp.dot(z.astype(jnp.bfloat16), cw1[...],
                     preferred_element_type=jnp.float32) + cb1[...]
        a2 = jnp.maximum(a2, 0.0)
        logits = jnp.dot(a2.astype(jnp.bfloat16), cw2[...],
                         preferred_element_type=jnp.float32) + cb2[...]
        cols = jax.lax.broadcasted_iota(jnp.int32, logits.shape, 1)
        logits = jnp.where(cols < n_cluster, logits, -1e30)
        logits = logits - jnp.max(logits, axis=-1, keepdims=True)
        e = jnp.exp(logits)
        p_ref[0] = (e / jnp.sum(e, axis=-1, keepdims=True)).astype(p_ref.dtype)

    return kernel


# --------------------------- parameters & forward ---------------------------


def init_params(key, input_dims, output_dims, n_cluster, hidden_dims, depths):
    """Lane-padded (to 128) weights; matmul weights bf16, biases f32.
    Conv taps pre-stacked as (3*n_blocks, Hp, Hp): tap k in {x[t-d], x[t], x[t+d]}."""
    hp = _round_up(hidden_dims)
    op = _round_up(output_dims)
    cp = _round_up(n_cluster)
    dinp = _round_up(input_dims)
    n_blocks = sum(depths)
    keys = iter(jax.random.split(key, 8 * n_blocks + 32))

    def lin_w(cin, cout, rpad, cpad):
        w = jax.random.normal(next(keys), (cin, cout), jnp.float32) / jnp.sqrt(float(cin))
        return (jnp.zeros((rpad, cpad), jnp.float32)
                .at[:cin, :cout].set(w).astype(jnp.bfloat16))

    def bias(cout, cpad):
        b = 0.01 * jax.random.normal(next(keys), (1, cout), jnp.float32)
        return jnp.zeros((1, cpad), jnp.float32).at[:, :cout].set(b)

    def conv_w():
        w = jax.random.normal(next(keys), (3, hidden_dims, hidden_dims),
                              jnp.float32) / jnp.sqrt(3.0 * hidden_dims)
        return (jnp.zeros((3, hp, hp), jnp.float32)
                .at[:, :hidden_dims, :hidden_dims].set(w).astype(jnp.bfloat16))

    params = {
        "fc_w": lin_w(input_dims, hidden_dims, dinp, hp),
        "fc_b": bias(hidden_dims, hp),
    }
    c1w, c1b, c2w, c2b, pw, pb = [], [], [], [], [], []
    for depth in depths:
        for _ in range(depth):
            c1w.append(conv_w()); c1b.append(bias(hidden_dims, hp))
            c2w.append(conv_w()); c2b.append(bias(hidden_dims, hp))
        pw.append(lin_w(hidden_dims, hidden_dims, hp, hp))   # final-block projector
        pb.append(bias(hidden_dims, hp))
    params["c1w"] = jnp.concatenate(c1w, axis=0)             # (3*n_blocks, hp, hp)
    params["c1b"] = jnp.stack(c1b, axis=0)                   # (n_blocks, 1, hp)
    params["c2w"] = jnp.concatenate(c2w, axis=0)
    params["c2b"] = jnp.stack(c2b, axis=0)
    params["pw"] = jnp.stack(pw, axis=0)                     # (n_groups, hp, hp)
    params["pb"] = jnp.stack(pb, axis=0)                     # (n_groups, 1, hp)

    params["rw1"] = lin_w(hidden_dims, hidden_dims, hp, hp)
    params["rb1"] = bias(hidden_dims, hp)
    params["rw2"] = lin_w(hidden_dims, output_dims, hp, op)
    params["rb2"] = bias(output_dims, op)
    params["cw1"] = lin_w(hidden_dims, hidden_dims, hp, hp)
    params["cb1"] = bias(hidden_dims, hp)
    params["cw2"] = lin_w(hidden_dims, n_cluster, hp, cp)
    params["cb2"] = bias(n_cluster, cp)
    return params


@functools.partial(jax.jit, static_argnames=("output_dims", "n_cluster", "depths"))
def ts_encoder_forward(params, x, *, output_dims, n_cluster, depths):
    """Eval-mode forward (mask='all_true', dropout=identity). Returns (r, p)."""
    B, T, Din = x.shape
    hp = params["fc_w"].shape[1]
    op = params["rw2"].shape[1]
    cp = params["cw2"].shape[1]
    dinp = params["fc_w"].shape[0]
    assert 2 ** (max(depths) - 1) < T, "max dilation must be < T"

    # Pad Din to a full 128-lane tile once (lane-dense NaN scan and matmul K).
    if Din < dinp:
        x = jnp.pad(x, ((0, 0), (0, 0), (0, dinp - Din)))

    kernel = make_forward_kernel(T, hp, depths, n_cluster)

    def w2(a):   # 2-D weight/bias: constant block, loaded once
        return pl.BlockSpec(a.shape, lambda i: (0, 0))

    def w3(a):   # 3-D stacked weights: constant block, loaded once
        return pl.BlockSpec(a.shape, lambda i: (0, 0, 0))

    in_specs = [
        pl.BlockSpec((1, T, dinp), lambda i: (i, 0, 0)),
        w2(params["fc_w"]), w2(params["fc_b"]),
        w3(params["c1w"]), w3(params["c1b"]),
        w3(params["c2w"]), w3(params["c2b"]),
        w3(params["pw"]), w3(params["pb"]),
        w2(params["rw1"]), w2(params["rb1"]),
        w2(params["rw2"]), w2(params["rb2"]),
        w2(params["cw1"]), w2(params["cb1"]),
        w2(params["cw2"]), w2(params["cb2"]),
    ]
    out_shape = (
        jax.ShapeDtypeStruct((B, T, op), jnp.float32),
        jax.ShapeDtypeStruct((B, 1, cp), jnp.float32),
    )
    out_specs = (
        pl.BlockSpec((1, T, op), lambda i: (i, 0, 0)),
        pl.BlockSpec((1, 1, cp), lambda i: (i, 0, 0)),
    )
    r, p = pl.pallas_call(
        kernel,
        out_shape=out_shape,
        grid=(B,),
        in_specs=in_specs,
        out_specs=out_specs,
        compiler_params=pltpu.CompilerParams(
            dimension_semantics=("parallel",),
            vmem_limit_bytes=32 * 1024 * 1024),
    )(x, params["fc_w"], params["fc_b"],
      params["c1w"], params["c1b"], params["c2w"], params["c2b"],
      params["pw"], params["pb"],
      params["rw1"], params["rb1"], params["rw2"], params["rb2"],
      params["cw1"], params["cb1"], params["cw2"], params["cb2"])

    return r[..., :output_dims], p[:, 0, :n_cluster]


# ----------------------------------- main ------------------------------------


if __name__ == "__main__":
    B, T = 2, 16
    input_dims, hidden_dims, output_dims, n_cluster = 8, 32, 16, 4
    depths = (2, 2)

    key = jax.random.PRNGKey(0)
    k_x, k_p = jax.random.split(key)
    x = jax.random.normal(k_x, (B, T, input_dims), jnp.float32)
    # Inject a NaN to exercise the nan_mask path (that whole time-step is zeroed).
    x = x.at[0, 3, 2].set(jnp.nan)

    params = init_params(k_p, input_dims, output_dims, n_cluster, hidden_dims, depths)

    r, p = ts_encoder_forward(params, x, output_dims=output_dims,
                              n_cluster=n_cluster, depths=depths)
    r, p = jax.block_until_ready(r), jax.block_until_ready(p)

    assert r.shape == (B, T, output_dims), r.shape
    assert p.shape == (B, n_cluster), p.shape
    assert bool(jnp.all(jnp.isfinite(r)))
    assert bool(jnp.all(p >= 0.0))
    assert bool(jnp.allclose(jnp.sum(p, axis=-1), 1.0, atol=1e-4))
    print("KERNEL_OK")
</pallas_src>

<mosaic_0001>
module attributes {stable_mosaic.version = 11 : i64} {
  func.func @kernel(%arg0: i32, %arg1: memref<1x16x128xf32, #tpu.memory_space<vmem>>, %arg2: memref<128x128xbf16, #tpu.memory_space<vmem>>, %arg3: memref<1x128xf32, #tpu.memory_space<vmem>>, %arg4: memref<12x128x128xbf16, #tpu.memory_space<vmem>>, %arg5: memref<4x1x128xf32, #tpu.memory_space<vmem>>, %arg6: memref<12x128x128xbf16, #tpu.memory_space<vmem>>, %arg7: memref<4x1x128xf32, #tpu.memory_space<vmem>>, %arg8: memref<2x128x128xbf16, #tpu.memory_space<vmem>>, %arg9: memref<2x1x128xf32, #tpu.memory_space<vmem>>, %arg10: memref<128x128xbf16, #tpu.memory_space<vmem>>, %arg11: memref<1x128xf32, #tpu.memory_space<vmem>>, %arg12: memref<128x128xbf16, #tpu.memory_space<vmem>>, %arg13: memref<1x128xf32, #tpu.memory_space<vmem>>, %arg14: memref<128x128xbf16, #tpu.memory_space<vmem>>, %arg15: memref<1x128xf32, #tpu.memory_space<vmem>>, %arg16: memref<128x128xbf16, #tpu.memory_space<vmem>>, %arg17: memref<1x128xf32, #tpu.memory_space<vmem>>, %arg18: memref<1x16x128xf32, #tpu.memory_space<vmem>>, %arg19: memref<1x1x128xf32, #tpu.memory_space<vmem>>) attributes {dimension_semantics = [#tpu.dimension_semantics<parallel>], iteration_bounds = array<i64: 2>, scalar_prefetch = 0 : i64, scratch_operands = 0 : i64, tpu.core_type = #tpu.core_type<tc>, window_params = [{transform_indices = @transform_0, window_bounds = array<i64: 1, 16, 128>}, {pipeline_mode = #tpu.pipeline_mode<synchronous>, transform_indices = @transform_1, window_bounds = array<i64: 128, 128>}, {pipeline_mode = #tpu.pipeline_mode<synchronous>, transform_indices = @transform_2, window_bounds = array<i64: 1, 128>}, {pipeline_mode = #tpu.pipeline_mode<synchronous>, transform_indices = @transform_3, window_bounds = array<i64: 12, 128, 128>}, {pipeline_mode = #tpu.pipeline_mode<synchronous>, transform_indices = @transform_4, window_bounds = array<i64: 4, 1, 128>}, {pipeline_mode = #tpu.pipeline_mode<synchronous>, transform_indices = @transform_5, window_bounds = array<i64: 12, 128, 128>}, {pipeline_mode = #tpu.pipeline_mode<synchronous>, transform_indices = @transform_6, window_bounds = array<i64: 4, 1, 128>}, {pipeline_mode = #tpu.pipeline_mode<synchronous>, transform_indices = @transform_7, window_bounds = array<i64: 2, 128, 128>}, {pipeline_mode = #tpu.pipeline_mode<synchronous>, transform_indices = @transform_8, window_bounds = array<i64: 2, 1, 128>}, {pipeline_mode = #tpu.pipeline_mode<synchronous>, transform_indices = @transform_9, window_bounds = array<i64: 128, 128>}, {pipeline_mode = #tpu.pipeline_mode<synchronous>, transform_indices = @transform_10, window_bounds = array<i64: 1, 128>}, {pipeline_mode = #tpu.pipeline_mode<synchronous>, transform_indices = @transform_11, window_bounds = array<i64: 128, 128>}, {pipeline_mode = #tpu.pipeline_mode<synchronous>, transform_indices = @transform_12, window_bounds = array<i64: 1, 128>}, {pipeline_mode = #tpu.pipeline_mode<synchronous>, transform_indices = @transform_13, window_bounds = array<i64: 128, 128>}, {pipeline_mode = #tpu.pipeline_mode<synchronous>, transform_indices = @transform_14, window_bounds = array<i64: 1, 128>}, {pipeline_mode = #tpu.pipeline_mode<synchronous>, transform_indices = @transform_15, window_bounds = array<i64: 128, 128>}, {pipeline_mode = #tpu.pipeline_mode<synchronous>, transform_indices = @transform_16, window_bounds = array<i64: 1, 128>}, {transform_indices = @transform_17, window_bounds = array<i64: 1, 16, 128>}, {transform_indices = @transform_18, window_bounds = array<i64: 1, 1, 128>}]} {
    %c0 = arith.constant 0 : index
    %c0_0 = arith.constant 0 : index
    %c0_1 = arith.constant 0 : index
    %0 = vector.load %arg1[%c0, %c0_0, %c0_1] : memref<1x16x128xf32, #tpu.memory_space<vmem>>, vector<1x16x128xf32>
    %1 = vector.shape_cast %0 : vector<1x16x128xf32> to vector<16x128xf32>
    %2 = arith.cmpf one, %1, %1 : vector<16x128xf32>
    %cst = arith.constant 1.000000e+00 : f32
    %cst_2 = arith.constant 0.000000e+00 : f32
    %3 = vector.broadcast %cst : f32 to vector<16x128xf32>
    %4 = vector.broadcast %cst_2 : f32 to vector<16x128xf32>
    %5 = arith.select %2, %3, %4 : vector<16x128xi1>, vector<16x128xf32>
    %cst_3 = arith.constant dense<0xFF800000> : vector<16xf32>
    %6 = vector.multi_reduction <maximumf>, %5, %cst_3 [1] : vector<16x128xf32> to vector<16xf32>
    %cst_4 = arith.constant 0.000000e+00 : f32
    %7 = vector.broadcast %cst_4 : f32 to vector<16xf32>
    %8 = arith.cmpf ogt, %6, %7 : vector<16xf32>
    %9 = vector.shape_cast %8 : vector<16xi1> to vector<16x1xi1>
    %cst_5 = arith.constant dense<true> : vector<16x1xi1>
    %10 = arith.xori %9, %cst_5 : vector<16x1xi1>
    %cst_6 = arith.constant 0.000000e+00 : f32
    %11 = vector.shape_cast %10 : vector<16x1xi1> to vector<16x1xi1>
    %12 = vector.broadcast %11 : vector<16x1xi1> to vector<16x128xi1>
    %13 = vector.broadcast %cst_6 : f32 to vector<16x128xf32>
    %14 = arith.select %12, %1, %13 : vector<16x128xi1>, vector<16x128xf32>
    %15 = arith.truncf %14 : vector<16x128xf32> to vector<16x128xbf16>
    %c0_7 = arith.constant 0 : index
    %c0_8 = arith.constant 0 : index
    %16 = vector.load %arg2[%c0_7, %c0_8] : memref<128x128xbf16, #tpu.memory_space<vmem>>, vector<128x128xbf16>
    %cst_9 = arith.constant dense<0.000000e+00> : vector<16x128xf32>
    %17 = tpu.matmul %15, %16, %cst_9 {dimension_numbers = #tpu.dot_dimension_numbers<[1], [0], [0], [1], [0, 0, 1, 1], [], []>} : vector<16x128xbf16>, vector<128x128xbf16>, vector<16x128xf32> -> vector<16x128xf32>
    %c0_10 = arith.constant 0 : index
    %c0_11 = arith.constant 0 : index
    %18 = vector.load %arg3[%c0_10, %c0_11] : memref<1x128xf32, #tpu.memory_space<vmem>>, vector<1x128xf32>
    %19 = vector.broadcast %18 : vector<1x128xf32> to vector<16x128xf32>
    %20 = arith.addf %17, %19 : vector<16x128xf32>
    %cst_12 = arith.constant 0.000000e+00 : f32
    %21 = vector.shape_cast %10 : vector<16x1xi1> to vector<16x1xi1>
    %22 = vector.broadcast %21 : vector<16x1xi1> to vector<16x128xi1>
    %23 = vector.broadcast %cst_12 : f32 to vector<16x128xf32>
    %24 = arith.select %22, %20, %23 : vector<16x128xi1>, vector<16x128xf32>
    %25 = arith.mulf %24, %24 : vector<16x128xf32>
    %26 = arith.mulf %24, %25 : vector<16x128xf32>
    %cst_13 = arith.constant 4.471500e-02 : f32
    %27 = vector.broadcast %cst_13 : f32 to vector<16x128xf32>
    %28 = arith.mulf %27, %26 : vector<16x128xf32>
    %29 = arith.addf %24, %28 : vector<16x128xf32>
    %cst_14 = arith.constant 0.797884583 : f32
    %30 = vector.broadcast %cst_14 : f32 to vector<16x128xf32>
    %31 = arith.mulf %30, %29 : vector<16x128xf32>
    %32 = math.tanh %31 : vector<16x128xf32>
    %cst_15 = arith.constant 1.000000e+00 : f32
    %33 = vector.broadcast %cst_15 : f32 to vector<16x128xf32>
    %34 = arith.addf %33, %32 : vector<16x128xf32>
    %cst_16 = arith.constant 5.000000e-01 : f32
    %35 = vector.broadcast %cst_16 : f32 to vector<16x128xf32>
    %36 = arith.mulf %35, %34 : vector<16x128xf32>
    %37 = arith.mulf %24, %36 : vector<16x128xf32>
    %38 = arith.truncf %37 : vector<16x128xf32> to vector<16x128xbf16>
    %c0_17 = arith.constant 0 : index
    %c0_18 = arith.constant 0 : index
    %c0_19 = arith.constant 0 : index
    %39 = vector.load %arg4[%c0_17, %c0_18, %c0_19] : memref<12x128x128xbf16, #tpu.memory_space<vmem>>, vector<1x128x128xbf16>
    %40 = vector.shape_cast %39 : vector<1x128x128xbf16> to vector<128x128xbf16>
    %cst_20 = arith.constant dense<0.000000e+00> : vector<16x128xf32>
    %41 = tpu.matmul %38, %40, %cst_20 {dimension_numbers = #tpu.dot_dimension_numbers<[1], [0], [0], [1], [0, 0, 1, 1], [], []>} : vector<16x128xbf16>, vector<128x128xbf16>, vector<16x128xf32> -> vector<16x128xf32>
    %c1 = arith.constant 1 : index
    %c0_21 = arith.constant 0 : index
    %c0_22 = arith.constant 0 : index
    %42 = vector.load %arg4[%c1, %c0_21, %c0_22] : memref<12x128x128xbf16, #tpu.memory_space<vmem>>, vector<1x128x128xbf16>
    %43 = vector.shape_cast %42 : vector<1x128x128xbf16> to vector<128x128xbf16>
    %cst_23 = arith.constant dense<0.000000e+00> : vector<16x128xf32>
    %44 = tpu.matmul %38, %43, %cst_23 {dimension_numbers = #tpu.dot_dimension_numbers<[1], [0], [0], [1], [0, 0, 1, 1], [], []>} : vector<16x128xbf16>, vector<128x128xbf16>, vector<16x128xf32> -> vector<16x128xf32>
    %c2 = arith.constant 2 : index
    %c0_24 = arith.constant 0 : index
    %c0_25 = arith.constant 0 : index
    %45 = vector.load %arg4[%c2, %c0_24, %c0_25] : memref<12x128x128xbf16, #tpu.memory_space<vmem>>, vector<1x128x128xbf16>
    %46 = vector.shape_cast %45 : vector<1x128x128xbf16> to vector<128x128xbf16>
    %cst_26 = arith.constant dense<0.000000e+00> : vector<16x128xf32>
    %47 = tpu.matmul %38, %46, %cst_26 {dimension_numbers = #tpu.dot_dimension_numbers<[1], [0], [0], [1], [0, 0, 1, 1], [], []>} : vector<16x128xbf16>, vector<128x128xbf16>, vector<16x128xf32> -> vector<16x128xf32>
    %cst_27 = arith.constant 0.000000e+00 : f32
    %48 = vector.broadcast %cst_27 : f32 to vector<1x128xf32>
    %49 = vector.extract_strided_slice %41 {offsets = [0, 0], sizes = [15, 128], strides = [1, 1]} : vector<16x128xf32> to vector<15x128xf32>
    %50 = tpu.concatenate %48, %49 in 0 : vector<1x128xf32>, vector<15x128xf32> -> vector<16x128xf32>
    %51 = arith.addf %50, %44 : vector<16x128xf32>
    %52 = vector.extract_strided_slice %47 {offsets = [1, 0], sizes = [15, 128], strides = [1, 1]} : vector<16x128xf32> to vector<15x128xf32>
    %cst_28 = arith.constant 0.000000e+00 : f32
    %53 = vector.broadcast %cst_28 : f32 to vector<1x128xf32>
    %54 = tpu.concatenate %52, %53 in 0 : vector<15x128xf32>, vector<1x128xf32> -> vector<16x128xf32>
    %55 = arith.addf %51, %54 : vector<16x128xf32>
    %c0_29 = arith.constant 0 : index
    %c0_30 = arith.constant 0 : index
    %c0_31 = arith.constant 0 : index
    %56 = vector.load %arg5[%c0_29, %c0_30, %c0_31] : memref<4x1x128xf32, #tpu.memory_space<vmem>>, vector<1x1x128xf32>
    %57 = vector.shape_cast %56 : vector<1x1x128xf32> to vector<1x128xf32>
    %58 = vector.broadcast %57 : vector<1x128xf32> to vector<16x128xf32>
    %59 = arith.addf %55, %58 : vector<16x128xf32>
    %60 = arith.mulf %59, %59 : vector<16x128xf32>
    %61 = arith.mulf %59, %60 : vector<16x128xf32>
    %cst_32 = arith.constant 4.471500e-02 : f32
    %62 = vector.broadcast %cst_32 : f32 to vector<16x128xf32>
    %63 = arith.mulf %62, %61 : vector<16x128xf32>
    %64 = arith.addf %59, %63 : vector<16x128xf32>
    %cst_33 = arith.constant 0.797884583 : f32
    %65 = vector.broadcast %cst_33 : f32 to vector<16x128xf32>
    %66 = arith.mulf %65, %64 : vector<16x128xf32>
    %67 = math.tanh %66 : vector<16x128xf32>
    %cst_34 = arith.constant 1.000000e+00 : f32
    %68 = vector.broadcast %cst_34 : f32 to vector<16x128xf32>
    %69 = arith.addf %68, %67 : vector<16x128xf32>
    %cst_35 = arith.constant 5.000000e-01 : f32
    %70 = vector.broadcast %cst_35 : f32 to vector<16x128xf32>
    %71 = arith.mulf %70, %69 : vector<16x128xf32>
    %72 = arith.mulf %59, %71 : vector<16x128xf32>
    %73 = arith.truncf %72 : vector<16x128xf32> to vector<16x128xbf16>
    %c0_36 = arith.constant 0 : index
    %c0_37 = arith.constant 0 : index
    %c0_38 = arith.constant 0 : index
    %74 = vector.load %arg6[%c0_36, %c0_37, %c0_38] : memref<12x128x128xbf16, #tpu.memory_space<vmem>>, vector<1x128x128xbf16>
    %75 = vector.shape_cast %74 : vector<1x128x128xbf16> to vector<128x128xbf16>
    %cst_39 = arith.constant dense<0.000000e+00> : vector<16x128xf32>
    %76 = tpu.matmul %73, %75, %cst_39 {dimension_numbers = #tpu.dot_dimension_numbers<[1], [0], [0], [1], [0, 0, 1, 1], [], []>} : vector<16x128xbf16>, vector<128x128xbf16>, vector<16x128xf32> -> vector<16x128xf32>
    %c1_40 = arith.constant 1 : index
    %c0_41 = arith.constant 0 : index
    %c0_42 = arith.constant 0 : index
    %77 = vector.load %arg6[%c1_40, %c0_41, %c0_42] : memref<12x128x128xbf16, #tpu.memory_space<vmem>>, vector<1x128x128xbf16>
    %78 = vector.shape_cast %77 : vector<1x128x128xbf16> to vector<128x128xbf16>
    %cst_43 = arith.constant dense<0.000000e+00> : vector<16x128xf32>
    %79 = tpu.matmul %73, %78, %cst_43 {dimension_numbers = #tpu.dot_dimension_numbers<[1], [0], [0], [1], [0, 0, 1, 1], [], []>} : vector<16x128xbf16>, vector<128x128xbf16>, vector<16x128xf32> -> vector<16x128xf32>
    %c2_44 = arith.constant 2 : index
    %c0_45 = arith.constant 0 : index
    %c0_46 = arith.constant 0 : index
    %80 = vector.load %arg6[%c2_44, %c0_45, %c0_46] : memref<12x128x128xbf16, #tpu.memory_space<vmem>>, vector<1x128x128xbf16>
    %81 = vector.shape_cast %80 : vector<1x128x128xbf16> to vector<128x128xbf16>
    %cst_47 = arith.constant dense<0.000000e+00> : vector<16x128xf32>
    %82 = tpu.matmul %73, %81, %cst_47 {dimension_numbers = #tpu.dot_dimension_numbers<[1], [0], [0], [1], [0, 0, 1, 1], [], []>} : vector<16x128xbf16>, vector<128x128xbf16>, vector<16x128xf32> -> vector<16x128xf32>
    %cst_48 = arith.constant 0.000000e+00 : f32
    %83 = vector.broadcast %cst_48 : f32 to vector<1x128xf32>
    %84 = vector.extract_strided_slice %76 {offsets = [0, 0], sizes = [15, 128], strides = [1, 1]} : vector<16x128xf32> to vector<15x128xf32>
    %85 = tpu.concatenate %83, %84 in 0 : vector<1x128xf32>, vector<15x128xf32> -> vector<16x128xf32>
    %86 = arith.addf %85, %79 : vector<16x128xf32>
    %87 = vector.extract_strided_slice %82 {offsets = [1, 0], sizes = [15, 128], strides = [1, 1]} : vector<16x128xf32> to vector<15x128xf32>
    %cst_49 = arith.constant 0.000000e+00 : f32
    %88 = vector.broadcast %cst_49 : f32 to vector<1x128xf32>
    %89 = tpu.concatenate %87, %88 in 0 : vector<15x128xf32>, vector<1x128xf32> -> vector<16x128xf32>
    %90 = arith.addf %86, %89 : vector<16x128xf32>
    %c0_50 = arith.constant 0 : index
    %c0_51 = arith.constant 0 : index
    %c0_52 = arith.constant 0 : index
    %91 = vector.load %arg7[%c0_50, %c0_51, %c0_52] : memref<4x1x128xf32, #tpu.memory_space<vmem>>, vector<1x1x128xf32>
    %92 = vector.shape_cast %91 : vector<1x1x128xf32> to vector<1x128xf32>
    %93 = vector.broadcast %92 : vector<1x128xf32> to vector<16x128xf32>
    %94 = arith.addf %90, %93 : vector<16x128xf32>
    %95 = arith.addf %94, %24 : vector<16x128xf32>
    %96 = arith.mulf %95, %95 : vector<16x128xf32>
    %97 = arith.mulf %95, %96 : vector<16x128xf32>
    %cst_53 = arith.constant 4.471500e-02 : f32
    %98 = vector.broadcast %cst_53 : f32 to vector<16x128xf32>
    %99 = arith.mulf %98, %97 : vector<16x128xf32>
    %100 = arith.addf %95, %99 : vector<16x128xf32>
    %cst_54 = arith.constant 0.797884583 : f32
    %101 = vector.broadcast %cst_54 : f32 to vector<16x128xf32>
    %102 = arith.mulf %101, %100 : vector<16x128xf32>
    %103 = math.tanh %102 : vector<16x128xf32>
    %cst_55 = arith.constant 1.000000e+00 : f32
    %104 = vector.broadcast %cst_55 : f32 to vector<16x128xf32>
    %105 = arith.addf %104, %103 : vector<16x128xf32>
    %cst_56 = arith.constant 5.000000e-01 : f32
    %106 = vector.broadcast %cst_56 : f32 to vector<16x128xf32>
    %107 = arith.mulf %106, %105 : vector<16x128xf32>
    %108 = arith.mulf %95, %107 : vector<16x128xf32>
    %109 = arith.truncf %108 : vector<16x128xf32> to vector<16x128xbf16>
    %c3 = arith.constant 3 : index
    %c0_57 = arith.constant 0 : index
    %c0_58 = arith.constant 0 : index
    %110 = vector.load %arg4[%c3, %c0_57, %c0_58] : memref<12x128x128xbf16, #tpu.memory_space<vmem>>, vector<1x128x128xbf16>
    %111 = vector.shape_cast %110 : vector<1x128x128xbf16> to vector<128x128xbf16>
    %cst_59 = arith.constant dense<0.000000e+00> : vector<16x128xf32>
    %112 = tpu.matmul %109, %111, %cst_59 {dimension_numbers = #tpu.dot_dimension_numbers<[1], [0], [0], [1], [0, 0, 1, 1], [], []>} : vector<16x128xbf16>, vector<128x128xbf16>, vector<16x128xf32> -> vector<16x128xf32>
    %c4 = arith.constant 4 : index
    %c0_60 = arith.constant 0 : index
    %c0_61 = arith.constant 0 : index
    %113 = vector.load %arg4[%c4, %c0_60, %c0_61] : memref<12x128x128xbf16, #tpu.memory_space<vmem>>, vector<1x128x128xbf16>
    %114 = vector.shape_cast %113 : vector<1x128x128xbf16> to vector<128x128xbf16>
    %cst_62 = arith.constant dense<0.000000e+00> : vector<16x128xf32>
    %115 = tpu.matmul %109, %114, %cst_62 {dimension_numbers = #tpu.dot_dimension_numbers<[1], [0], [0], [1], [0, 0, 1, 1], [], []>} : vector<16x128xbf16>, vector<128x128xbf16>, vector<16x128xf32> -> vector<16x128xf32>
    %c5 = arith.constant 5 : index
    %c0_63 = arith.constant 0 : index
    %c0_64 = arith.constant 0 : index
    %116 = vector.load %arg4[%c5, %c0_63, %c0_64] : memref<12x128x128xbf16, #tpu.memory_space<vmem>>, vector<1x128x128xbf16>
    %117 = vector.shape_cast %116 : vector<1x128x128xbf16> to vector<128x128xbf16>
    %cst_65 = arith.constant dense<0.000000e+00> : vector<16x128xf32>
    %118 = tpu.matmul %109, %117, %cst_65 {dimension_numbers = #tpu.dot_dimension_numbers<[1], [0], [0], [1], [0, 0, 1, 1], [], []>} : vector<16x128xbf16>, vector<128x128xbf16>, vector<16x128xf32> -> vector<16x128xf32>
    %cst_66 = arith.constant 0.000000e+00 : f32
    %119 = vector.broadcast %cst_66 : f32 to vector<2x128xf32>
    %120 = vector.extract_strided_slice %112 {offsets = [0, 0], sizes = [14, 128], strides = [1, 1]} : vector<16x128xf32> to vector<14x128xf32>
    %121 = tpu.concatenate %119, %120 in 0 : vector<2x128xf32>, vector<14x128xf32> -> vector<16x128xf32>
    %122 = arith.addf %121, %115 : vector<16x128xf32>
    %123 = vector.extract_strided_slice %118 {offsets = [2, 0], sizes = [14, 128], strides = [1, 1]} : vector<16x128xf32> to vector<14x128xf32>
    %cst_67 = arith.constant 0.000000e+00 : f32
    %124 = vector.broadcast %cst_67 : f32 to vector<2x128xf32>
    %125 = tpu.concatenate %123, %124 in 0 : vector<14x128xf32>, vector<2x128xf32> -> vector<16x128xf32>
    %126 = arith.addf %122, %125 : vector<16x128xf32>
    %c1_68 = arith.constant 1 : index
    %c0_69 = arith.constant 0 : index
    %c0_70 = arith.constant 0 : index
    %127 = vector.load %arg5[%c1_68, %c0_69, %c0_70] : memref<4x1x128xf32, #tpu.memory_space<vmem>>, vector<1x1x128xf32>
    %128 = vector.shape_cast %127 : vector<1x1x128xf32> to vector<1x128xf32>
    %129 = vector.broadcast %128 : vector<1x128xf32> to vector<16x128xf32>
    %130 = arith.addf %126, %129 : vector<16x128xf32>
    %131 = arith.mulf %130, %130 : vector<16x128xf32>
    %132 = arith.mulf %130, %131 : vector<16x128xf32>
    %cst_71 = arith.constant 4.471500e-02 : f32
    %133 = vector.broadcast %cst_71 : f32 to vector<16x128xf32>
    %134 = arith.mulf %133, %132 : vector<16x128xf32>
    %135 = arith.addf %130, %134 : vector<16x128xf32>
    %cst_72 = arith.constant 0.797884583 : f32
    %136 = vector.broadcast %cst_72 : f32 to vector<16x128xf32>
    %137 = arith.mulf %136, %135 : vector<16x128xf32>
    %138 = math.tanh %137 : vector<16x128xf32>
    %cst_73 = arith.constant 1.000000e+00 : f32
    %139 = vector.broadcast %cst_73 : f32 to vector<16x128xf32>
    %140 = arith.addf %139, %138 : vector<16x128xf32>
    %cst_74 = arith.constant 5.000000e-01 : f32
    %141 = vector.broadcast %cst_74 : f32 to vector<16x128xf32>
    %142 = arith.mulf %141, %140 : vector<16x128xf32>
    %143 = arith.mulf %130, %142 : vector<16x128xf32>
    %144 = arith.truncf %143 : vector<16x128xf32> to vector<16x128xbf16>
    %c3_75 = arith.constant 3 : index
    %c0_76 = arith.constant 0 : index
    %c0_77 = arith.constant 0 : index
    %145 = vector.load %arg6[%c3_75, %c0_76, %c0_77] : memref<12x128x128xbf16, #tpu.memory_space<vmem>>, vector<1x128x128xbf16>
    %146 = vector.shape_cast %145 : vector<1x128x128xbf16> to vector<128x128xbf16>
    %cst_78 = arith.constant dense<0.000000e+00> : vector<16x128xf32>
    %147 = tpu.matmul %144, %146, %cst_78 {dimension_numbers = #tpu.dot_dimension_numbers<[1], [0], [0], [1], [0, 0, 1, 1], [], []>} : vector<16x128xbf16>, vector<128x128xbf16>, vector<16x128xf32> -> vector<16x128xf32>
    %c4_79 = arith.constant 4 : index
    %c0_80 = arith.constant 0 : index
    %c0_81 = arith.constant 0 : index
    %148 = vector.load %arg6[%c4_79, %c0_80, %c0_81] : memref<12x128x128xbf16, #tpu.memory_space<vmem>>, vector<1x128x128xbf16>
    %149 = vector.shape_cast %148 : vector<1x128x128xbf16> to vector<128x128xbf16>
    %cst_82 = arith.constant dense<0.000000e+00> : vector<16x128xf32>
    %150 = tpu.matmul %144, %149, %cst_82 {dimension_numbers = #tpu.dot_dimension_numbers<[1], [0], [0], [1], [0, 0, 1, 1], [], []>} : vector<16x128xbf16>, vector<128x128xbf16>, vector<16x128xf32> -> vector<16x128xf32>
    %c5_83 = arith.constant 5 : index
    %c0_84 = arith.constant 0 : index
    %c0_85 = arith.constant 0 : index
    %151 = vector.load %arg6[%c5_83, %c0_84, %c0_85] : memref<12x128x128xbf16, #tpu.memory_space<vmem>>, vector<1x128x128xbf16>
    %152 = vector.shape_cast %151 : vector<1x128x128xbf16> to vector<128x128xbf16>
    %cst_86 = arith.constant dense<0.000000e+00> : vector<16x128xf32>
    %153 = tpu.matmul %144, %152, %cst_86 {dimension_numbers = #tpu.dot_dimension_numbers<[1], [0], [0], [1], [0, 0, 1, 1], [], []>} : vector<16x128xbf16>, vector<128x128xbf16>, vector<16x128xf32> -> vector<16x128xf32>
    %cst_87 = arith.constant 0.000000e+00 : f32
    %154 = vector.broadcast %cst_87 : f32 to vector<2x128xf32>
    %155 = vector.extract_strided_slice %147 {offsets = [0, 0], sizes = [14, 128], strides = [1, 1]} : vector<16x128xf32> to vector<14x128xf32>
    %156 = tpu.concatenate %154, %155 in 0 : vector<2x128xf32>, vector<14x128xf32> -> vector<16x128xf32>
    %157 = arith.addf %156, %150 : vector<16x128xf32>
    %158 = vector.extract_strided_slice %153 {offsets = [2, 0], sizes = [14, 128], strides = [1, 1]} : vector<16x128xf32> to vector<14x128xf32>
    %cst_88 = arith.constant 0.000000e+00 : f32
    %159 = vector.broadcast %cst_88 : f32 to vector<2x128xf32>
    %160 = tpu.concatenate %158, %159 in 0 : vector<14x128xf32>, vector<2x128xf32> -> vector<16x128xf32>
    %161 = arith.addf %157, %160 : vector<16x128xf32>
    %c1_89 = arith.constant 1 : index
    %c0_90 = arith.constant 0 : index
    %c0_91 = arith.constant 0 : index
    %162 = vector.load %arg7[%c1_89, %c0_90, %c0_91] : memref<4x1x128xf32, #tpu.memory_space<vmem>>, vector<1x1x128xf32>
    %163 = vector.shape_cast %162 : vector<1x1x128xf32> to vector<1x128xf32>
    %164 = vector.broadcast %163 : vector<1x128xf32> to vector<16x128xf32>
    %165 = arith.addf %161, %164 : vector<16x128xf32>
    %166 = arith.truncf %95 : vector<16x128xf32> to vector<16x128xbf16>
    %c0_92 = arith.constant 0 : index
    %c0_93 = arith.constant 0 : index
    %c0_94 = arith.constant 0 : index
    %167 = vector.load %arg8[%c0_92, %c0_93, %c0_94] : memref<2x128x128xbf16, #tpu.memory_space<vmem>>, vector<1x128x128xbf16>
    %168 = vector.shape_cast %167 : vector<1x128x128xbf16> to vector<128x128xbf16>
    %cst_95 = arith.constant dense<0.000000e+00> : vector<16x128xf32>
    %169 = tpu.matmul %166, %168, %cst_95 {dimension_numbers = #tpu.dot_dimension_numbers<[1], [0], [0], [1], [0, 0, 1, 1], [], []>} : vector<16x128xbf16>, vector<128x128xbf16>, vector<16x128xf32> -> vector<16x128xf32>
    %c0_96 = arith.constant 0 : index
    %c0_97 = arith.constant 0 : index
    %c0_98 = arith.constant 0 : index
    %170 = vector.load %arg9[%c0_96, %c0_97, %c0_98] : memref<2x1x128xf32, #tpu.memory_space<vmem>>, vector<1x1x128xf32>
    %171 = vector.shape_cast %170 : vector<1x1x128xf32> to vector<1x128xf32>
    %172 = vector.broadcast %171 : vector<1x128xf32> to vector<16x128xf32>
    %173 = arith.addf %169, %172 : vector<16x128xf32>
    %174 = arith.addf %165, %173 : vector<16x128xf32>
    %175 = arith.addf %174, %24 : vector<16x128xf32>
    %176 = arith.mulf %175, %175 : vector<16x128xf32>
    %177 = arith.mulf %175, %176 : vector<16x128xf32>
    %cst_99 = arith.constant 4.471500e-02 : f32
    %178 = vector.broadcast %cst_99 : f32 to vector<16x128xf32>
    %179 = arith.mulf %178, %177 : vector<16x128xf32>
    %180 = arith.addf %175, %179 : vector<16x128xf32>
    %cst_100 = arith.constant 0.797884583 : f32
    %181 = vector.broadcast %cst_100 : f32 to vector<16x128xf32>
    %182 = arith.mulf %181, %180 : vector<16x128xf32>
    %183 = math.tanh %182 : vector<16x128xf32>
    %cst_101 = arith.constant 1.000000e+00 : f32
    %184 = vector.broadcast %cst_101 : f32 to vector<16x128xf32>
    %185 = arith.addf %184, %183 : vector<16x128xf32>
    %cst_102 = arith.constant 5.000000e-01 : f32
    %186 = vector.broadcast %cst_102 : f32 to vector<16x128xf32>
    %187 = arith.mulf %186, %185 : vector<16x128xf32>
    %188 = arith.mulf %175, %187 : vector<16x128xf32>
    %189 = arith.truncf %188 : vector<16x128xf32> to vector<16x128xbf16>
    %c6 = arith.constant 6 : index
    %c0_103 = arith.constant 0 : index
    %c0_104 = arith.constant 0 : index
    %190 = vector.load %arg4[%c6, %c0_103, %c0_104] : memref<12x128x128xbf16, #tpu.memory_space<vmem>>, vector<1x128x128xbf16>
    %191 = vector.shape_cast %190 : vector<1x128x128xbf16> to vector<128x128xbf16>
    %cst_105 = arith.constant dense<0.000000e+00> : vector<16x128xf32>
    %192 = tpu.matmul %189, %191, %cst_105 {dimension_numbers = #tpu.dot_dimension_numbers<[1], [0], [0], [1], [0, 0, 1, 1], [], []>} : vector<16x128xbf16>, vector<128x128xbf16>, vector<16x128xf32> -> vector<16x128xf32>
    %c7 = arith.constant 7 : index
    %c0_106 = arith.constant 0 : index
    %c0_107 = arith.constant 0 : index
    %193 = vector.load %arg4[%c7, %c0_106, %c0_107] : memref<12x128x128xbf16, #tpu.memory_space<vmem>>, vector<1x128x128xbf16>
    %194 = vector.shape_cast %193 : vector<1x128x128xbf16> to vector<128x128xbf16>
    %cst_108 = arith.constant dense<0.000000e+00> : vector<16x128xf32>
    %195 = tpu.matmul %189, %194, %cst_108 {dimension_numbers = #tpu.dot_dimension_numbers<[1], [0], [0], [1], [0, 0, 1, 1], [], []>} : vector<16x128xbf16>, vector<128x128xbf16>, vector<16x128xf32> -> vector<16x128xf32>
    %c8 = arith.constant 8 : index
    %c0_109 = arith.constant 0 : index
    %c0_110 = arith.constant 0 : index
    %196 = vector.load %arg4[%c8, %c0_109, %c0_110] : memref<12x128x128xbf16, #tpu.memory_space<vmem>>, vector<1x128x128xbf16>
    %197 = vector.shape_cast %196 : vector<1x128x128xbf16> to vector<128x128xbf16>
    %cst_111 = arith.constant dense<0.000000e+00> : vector<16x128xf32>
    %198 = tpu.matmul %189, %197, %cst_111 {dimension_numbers = #tpu.dot_dimension_numbers<[1], [0], [0], [1], [0, 0, 1, 1], [], []>} : vector<16x128xbf16>, vector<128x128xbf16>, vector<16x128xf32> -> vector<16x128xf32>
    %cst_112 = arith.constant 0.000000e+00 : f32
    %199 = vector.broadcast %cst_112 : f32 to vector<1x128xf32>
    %200 = vector.extract_strided_slice %192 {offsets = [0, 0], sizes = [15, 128], strides = [1, 1]} : vector<16x128xf32> to vector<15x128xf32>
    %201 = tpu.concatenate %199, %200 in 0 : vector<1x128xf32>, vector<15x128xf32> -> vector<16x128xf32>
    %202 = arith.addf %201, %195 : vector<16x128xf32>
    %203 = vector.extract_strided_slice %198 {offsets = [1, 0], sizes = [15, 128], strides = [1, 1]} : vector<16x128xf32> to vector<15x128xf32>
    %cst_113 = arith.constant 0.000000e+00 : f32
    %204 = vector.broadcast %cst_113 : f32 to vector<1x128xf32>
    %205 = tpu.concatenate %203, %204 in 0 : vector<15x128xf32>, vector<1x128xf32> -> vector<16x128xf32>
    %206 = arith.addf %202, %205 : vector<16x128xf32>
    %c2_114 = arith.constant 2 : index
    %c0_115 = arith.constant 0 : index
    %c0_116 = arith.constant 0 : index
    %207 = vector.load %arg5[%c2_114, %c0_115, %c0_116] : memref<4x1x128xf32, #tpu.memory_space<vmem>>, vector<1x1x128xf32>
    %208 = vector.shape_cast %207 : vector<1x1x128xf32> to vector<1x128xf32>
    %209 = vector.broadcast %208 : vector<1x128xf32> to vector<16x128xf32>
    %210 = arith.addf %206, %209 : vector<16x128xf32>
    %211 = arith.mulf %210, %210 : vector<16x128xf32>
    %212 = arith.mulf %210, %211 : vector<16x128xf32>
    %cst_117 = arith.constant 4.471500e-02 : f32
    %213 = vector.broadcast %cst_117 : f32 to vector<16x128xf32>
    %214 = arith.mulf %213, %212 : vector<16x128xf32>
    %215 = arith.addf %210, %214 : vector<16x128xf32>
    %cst_118 = arith.constant 0.797884583 : f32
    %216 = vector.broadcast %cst_118 : f32 to vector<16x128xf32>
    %217 = arith.mulf %216, %215 : vector<16x128xf32>
    %218 = math.tanh %217 : vector<16x128xf32>
    %cst_119 = arith.constant 1.000000e+00 : f32
    %219 = vector.broadcast %cst_119 : f32 to vector<16x128xf32>
    %220 = arith.addf %219, %218 : vector<16x128xf32>
    %cst_120 = arith.constant 5.000000e-01 : f32
    %221 = vector.broadcast %cst_120 : f32 to vector<16x128xf32>
    %222 = arith.mulf %221, %220 : vector<16x128xf32>
    %223 = arith.mulf %210, %222 : vector<16x128xf32>
    %224 = arith.truncf %223 : vector<16x128xf32> to vector<16x128xbf16>
    %c6_121 = arith.constant 6 : index
    %c0_122 = arith.constant 0 : index
    %c0_123 = arith.constant 0 : index
    %225 = vector.load %arg6[%c6_121, %c0_122, %c0_123] : memref<12x128x128xbf16, #tpu.memory_space<vmem>>, vector<1x128x128xbf16>
    %226 = vector.shape_cast %225 : vector<1x128x128xbf16> to vector<128x128xbf16>
    %cst_124 = arith.constant dense<0.000000e+00> : vector<16x128xf32>
    %227 = tpu.matmul %224, %226, %cst_124 {dimension_numbers = #tpu.dot_dimension_numbers<[1], [0], [0], [1], [0, 0, 1, 1], [], []>} : vector<16x128xbf16>, vector<128x128xbf16>, vector<16x128xf32> -> vector<16x128xf32>
    %c7_125 = arith.constant 7 : index
    %c0_126 = arith.constant 0 : index
    %c0_127 = arith.constant 0 : index
    %228 = vector.load %arg6[%c7_125, %c0_126, %c0_127] : memref<12x128x128xbf16, #tpu.memory_space<vmem>>, vector<1x128x128xbf16>
    %229 = vector.shape_cast %228 : vector<1x128x128xbf16> to vector<128x128xbf16>
    %cst_128 = arith.constant dense<0.000000e+00> : vector<16x128xf32>
    %230 = tpu.matmul %224, %229, %cst_128 {dimension_numbers = #tpu.dot_dimension_numbers<[1], [0], [0], [1], [0, 0, 1, 1], [], []>} : vector<16x128xbf16>, vector<128x128xbf16>, vector<16x128xf32> -> vector<16x128xf32>
    %c8_129 = arith.constant 8 : index
    %c0_130 = arith.constant 0 : index
    %c0_131 = arith.constant 0 : index
    %231 = vector.load %arg6[%c8_129, %c0_130, %c0_131] : memref<12x128x128xbf16, #tpu.memory_space<vmem>>, vector<1x128x128xbf16>
    %232 = vector.shape_cast %231 : vector<1x128x128xbf16> to vector<128x128xbf16>
    %cst_132 = arith.constant dense<0.000000e+00> : vector<16x128xf32>
    %233 = tpu.matmul %224, %232, %cst_132 {dimension_numbers = #tpu.dot_dimension_numbers<[1], [0], [0], [1], [0, 0, 1, 1], [], []>} : vector<16x128xbf16>, vector<128x128xbf16>, vector<16x128xf32> -> vector<16x128xf32>
    %cst_133 = arith.constant 0.000000e+00 : f32
    %234 = vector.broadcast %cst_133 : f32 to vector<1x128xf32>
    %235 = vector.extract_strided_slice %227 {offsets = [0, 0], sizes = [15, 128], strides = [1, 1]} : vector<16x128xf32> to vector<15x128xf32>
    %236 = tpu.concatenate %234, %235 in 0 : vector<1x128xf32>, vector<15x128xf32> -> vector<16x128xf32>
    %237 = arith.addf %236, %230 : vector<16x128xf32>
    %238 = vector.extract_strided_slice %233 {offsets = [1, 0], sizes = [15, 128], strides = [1, 1]} : vector<16x128xf32> to vector<15x128xf32>
    %cst_134 = arith.constant 0.000000e+00 : f32
    %239 = vector.broadcast %cst_134 : f32 to vector<1x128xf32>
    %240 = tpu.concatenate %238, %239 in 0 : vector<15x128xf32>, vector<1x128xf32> -> vector<16x128xf32>
    %241 = arith.addf %237, %240 : vector<16x128xf32>
    %c2_135 = arith.constant 2 : index
    %c0_136 = arith.constant 0 : index
    %c0_137 = arith.constant 0 : index
    %242 = vector.load %arg7[%c2_135, %c0_136, %c0_137] : memref<4x1x128xf32, #tpu.memory_space<vmem>>, vector<1x1x128xf32>
    %243 = vector.shape_cast %242 : vector<1x1x128xf32> to vector<1x128xf32>
    %244 = vector.broadcast %243 : vector<1x128xf32> to vector<16x128xf32>
    %245 = arith.addf %241, %244 : vector<16x128xf32>
    %246 = arith.addf %245, %175 : vector<16x128xf32>
    %247 = arith.mulf %246, %246 : vector<16x128xf32>
    %248 = arith.mulf %246, %247 : vector<16x128xf32>
    %cst_138 = arith.constant 4.471500e-02 : f32
    %249 = vector.broadcast %cst_138 : f32 to vector<16x128xf32>
    %250 = arith.mulf %249, %248 : vector<16x128xf32>
    %251 = arith.addf %246, %250 : vector<16x128xf32>
    %cst_139 = arith.constant 0.797884583 : f32
    %252 = vector.broadcast %cst_139 : f32 to vector<16x128xf32>
    %253 = arith.mulf %252, %251 : vector<16x128xf32>
    %254 = math.tanh %253 : vector<16x128xf32>
    %cst_140 = arith.constant 1.000000e+00 : f32
    %255 = vector.broadcast %cst_140 : f32 to vector<16x128xf32>
    %256 = arith.addf %255, %254 : vector<16x128xf32>
    %cst_141 = arith.constant 5.000000e-01 : f32
    %257 = vector.broadcast %cst_141 : f32 to vector<16x128xf32>
    %258 = arith.mulf %257, %256 : vector<16x128xf32>
    %259 = arith.mulf %246, %258 : vector<16x128xf32>
    %260 = arith.truncf %259 : vector<16x128xf32> to vector<16x128xbf16>
    %c9 = arith.constant 9 : index
    %c0_142 = arith.constant 0 : index
    %c0_143 = arith.constant 0 : index
    %261 = vector.load %arg4[%c9, %c0_142, %c0_143] : memref<12x128x128xbf16, #tpu.memory_space<vmem>>, vector<1x128x128xbf16>
    %262 = vector.shape_cast %261 : vector<1x128x128xbf16> to vector<128x128xbf16>
    %cst_144 = arith.constant dense<0.000000e+00> : vector<16x128xf32>
    %263 = tpu.matmul %260, %262, %cst_144 {dimension_numbers = #tpu.dot_dimension_numbers<[1], [0], [0], [1], [0, 0, 1, 1], [], []>} : vector<16x128xbf16>, vector<128x128xbf16>, vector<16x128xf32> -> vector<16x128xf32>
    %c10 = arith.constant 10 : index
    %c0_145 = arith.constant 0 : index
    %c0_146 = arith.constant 0 : index
    %264 = vector.load %arg4[%c10, %c0_145, %c0_146] : memref<12x128x128xbf16, #tpu.memory_space<vmem>>, vector<1x128x128xbf16>
    %265 = vector.shape_cast %264 : vector<1x128x128xbf16> to vector<128x128xbf16>
    %cst_147 = arith.constant dense<0.000000e+00> : vector<16x128xf32>
    %266 = tpu.matmul %260, %265, %cst_147 {dimension_numbers = #tpu.dot_dimension_numbers<[1], [0], [0], [1], [0, 0, 1, 1], [], []>} : vector<16x128xbf16>, vector<128x128xbf16>, vector<16x128xf32> -> vector<16x128xf32>
    %c11 = arith.constant 11 : index
    %c0_148 = arith.constant 0 : index
    %c0_149 = arith.constant 0 : index
    %267 = vector.load %arg4[%c11, %c0_148, %c0_149] : memref<12x128x128xbf16, #tpu.memory_space<vmem>>, vector<1x128x128xbf16>
    %268 = vector.shape_cast %267 : vector<1x128x128xbf16> to vector<128x128xbf16>
    %cst_150 = arith.constant dense<0.000000e+00> : vector<16x128xf32>
    %269 = tpu.matmul %260, %268, %cst_150 {dimension_numbers = #tpu.dot_dimension_numbers<[1], [0], [0], [1], [0, 0, 1, 1], [], []>} : vector<16x128xbf16>, vector<128x128xbf16>, vector<16x128xf32> -> vector<16x128xf32>
    %cst_151 = arith.constant 0.000000e+00 : f32
    %270 = vector.broadcast %cst_151 : f32 to vector<2x128xf32>
    %271 = vector.extract_strided_slice %263 {offsets = [0, 0], sizes = [14, 128], strides = [1, 1]} : vector<16x128xf32> to vector<14x128xf32>
    %272 = tpu.concatenate %270, %271 in 0 : vector<2x128xf32>, vector<14x128xf32> -> vector<16x128xf32>
    %273 = arith.addf %272, %266 : vector<16x128xf32>
    %274 = vector.extract_strided_slice %269 {offsets = [2, 0], sizes = [14, 128], strides = [1, 1]} : vector<16x128xf32> to vector<14x128xf32>
    %cst_152 = arith.constant 0.000000e+00 : f32
    %275 = vector.broadcast %cst_152 : f32 to vector<2x128xf32>
    %276 = tpu.concatenate %274, %275 in 0 : vector<14x128xf32>, vector<2x128xf32> -> vector<16x128xf32>
    %277 = arith.addf %273, %276 : vector<16x128xf32>
    %c3_153 = arith.constant 3 : index
    %c0_154 = arith.constant 0 : index
    %c0_155 = arith.constant 0 : index
    %278 = vector.load %arg5[%c3_153, %c0_154, %c0_155] : memref<4x1x128xf32, #tpu.memory_space<vmem>>, vector<1x1x128xf32>
    %279 = vector.shape_cast %278 : vector<1x1x128xf32> to vector<1x128xf32>
    %280 = vector.broadcast %279 : vector<1x128xf32> to vector<16x128xf32>
    %281 = arith.addf %277, %280 : vector<16x128xf32>
    %282 = arith.mulf %281, %281 : vector<16x128xf32>
    %283 = arith.mulf %281, %282 : vector<16x128xf32>
    %cst_156 = arith.constant 4.471500e-02 : f32
    %284 = vector.broadcast %cst_156 : f32 to vector<16x128xf32>
    %285 = arith.mulf %284, %283 : vector<16x128xf32>
    %286 = arith.addf %281, %285 : vector<16x128xf32>
    %cst_157 = arith.constant 0.797884583 : f32
    %287 = vector.broadcast %cst_157 : f32 to vector<16x128xf32>
    %288 = arith.mulf %287, %286 : vector<16x128xf32>
    %289 = math.tanh %288 : vector<16x128xf32>
    %cst_158 = arith.constant 1.000000e+00 : f32
    %290 = vector.broadcast %cst_158 : f32 to vector<16x128xf32>
    %291 = arith.addf %290, %289 : vector<16x128xf32>
    %cst_159 = arith.constant 5.000000e-01 : f32
    %292 = vector.broadcast %cst_159 : f32 to vector<16x128xf32>
    %293 = arith.mulf %292, %291 : vector<16x128xf32>
    %294 = arith.mulf %281, %293 : vector<16x128xf32>
    %295 = arith.truncf %294 : vector<16x128xf32> to vector<16x128xbf16>
    %c9_160 = arith.constant 9 : index
    %c0_161 = arith.constant 0 : index
    %c0_162 = arith.constant 0 : index
    %296 = vector.load %arg6[%c9_160, %c0_161, %c0_162] : memref<12x128x128xbf16, #tpu.memory_space<vmem>>, vector<1x128x128xbf16>
    %297 = vector.shape_cast %296 : vector<1x128x128xbf16> to vector<128x128xbf16>
    %cst_163 = arith.constant dense<0.000000e+00> : vector<16x128xf32>
    %298 = tpu.matmul %295, %297, %cst_163 {dimension_numbers = #tpu.dot_dimension_numbers<[1], [0], [0], [1], [0, 0, 1, 1], [], []>} : vector<16x128xbf16>, vector<128x128xbf16>, vector<16x128xf32> -> vector<16x128xf32>
    %c10_164 = arith.constant 10 : index
    %c0_165 = arith.constant 0 : index
    %c0_166 = arith.constant 0 : index
    %299 = vector.load %arg6[%c10_164, %c0_165, %c0_166] : memref<12x128x128xbf16, #tpu.memory_space<vmem>>, vector<1x128x128xbf16>
    %300 = vector.shape_cast %299 : vector<1x128x128xbf16> to vector<128x128xbf16>
    %cst_167 = arith.constant dense<0.000000e+00> : vector<16x128xf32>
    %301 = tpu.matmul %295, %300, %cst_167 {dimension_numbers = #tpu.dot_dimension_numbers<[1], [0], [0], [1], [0, 0, 1, 1], [], []>} : vector<16x128xbf16>, vector<128x128xbf16>, vector<16x128xf32> -> vector<16x128xf32>
    %c11_168 = arith.constant 11 : index
    %c0_169 = arith.constant 0 : index
    %c0_170 = arith.constant 0 : index
    %302 = vector.load %arg6[%c11_168, %c0_169, %c0_170] : memref<12x128x128xbf16, #tpu.memory_space<vmem>>, vector<1x128x128xbf16>
    %303 = vector.shape_cast %302 : vector<1x128x128xbf16> to vector<128x128xbf16>
    %cst_171 = arith.constant dense<0.000000e+00> : vector<16x128xf32>
    %304 = tpu.matmul %295, %303, %cst_171 {dimension_numbers = #tpu.dot_dimension_numbers<[1], [0], [0], [1], [0, 0, 1, 1], [], []>} : vector<16x128xbf16>, vector<128x128xbf16>, vector<16x128xf32> -> vector<16x128xf32>
    %cst_172 = arith.constant 0.000000e+00 : f32
    %305 = vector.broadcast %cst_172 : f32 to vector<2x128xf32>
    %306 = vector.extract_strided_slice %298 {offsets = [0, 0], sizes = [14, 128], strides = [1, 1]} : vector<16x128xf32> to vector<14x128xf32>
    %307 = tpu.concatenate %305, %306 in 0 : vector<2x128xf32>, vector<14x128xf32> -> vector<16x128xf32>
    %308 = arith.addf %307, %301 : vector<16x128xf32>
    %309 = vector.extract_strided_slice %304 {offsets = [2, 0], sizes = [14, 128], strides = [1, 1]} : vector<16x128xf32> to vector<14x128xf32>
    %cst_173 = arith.constant 0.000000e+00 : f32
    %310 = vector.broadcast %cst_173 : f32 to vector<2x128xf32>
    %311 = tpu.concatenate %309, %310 in 0 : vector<14x128xf32>, vector<2x128xf32> -> vector<16x128xf32>
    %312 = arith.addf %308, %311 : vector<16x128xf32>
    %c3_174 = arith.constant 3 : index
    %c0_175 = arith.constant 0 : index
    %c0_176 = arith.constant 0 : index
    %313 = vector.load %arg7[%c3_174, %c0_175, %c0_176] : memref<4x1x128xf32, #tpu.memory_space<vmem>>, vector<1x1x128xf32>
    %314 = vector.shape_cast %313 : vector<1x1x128xf32> to vector<1x128xf32>
    %315 = vector.broadcast %314 : vector<1x128xf32> to vector<16x128xf32>
    %316 = arith.addf %312, %315 : vector<16x128xf32>
    %317 = arith.truncf %246 : vector<16x128xf32> to vector<16x128xbf16>
    %c1_177 = arith.constant 1 : index
    %c0_178 = arith.constant 0 : index
    %c0_179 = arith.constant 0 : index
    %318 = vector.load %arg8[%c1_177, %c0_178, %c0_179] : memref<2x128x128xbf16, #tpu.memory_space<vmem>>, vector<1x128x128xbf16>
    %319 = vector.shape_cast %318 : vector<1x128x128xbf16> to vector<128x128xbf16>
    %cst_180 = arith.constant dense<0.000000e+00> : vector<16x128xf32>
    %320 = tpu.matmul %317, %319, %cst_180 {dimension_numbers = #tpu.dot_dimension_numbers<[1], [0], [0], [1], [0, 0, 1, 1], [], []>} : vector<16x128xbf16>, vector<128x128xbf16>, vector<16x128xf32> -> vector<16x128xf32>
    %c1_181 = arith.constant 1 : index
    %c0_182 = arith.constant 0 : index
    %c0_183 = arith.constant 0 : index
    %321 = vector.load %arg9[%c1_181, %c0_182, %c0_183] : memref<2x1x128xf32, #tpu.memory_space<vmem>>, vector<1x1x128xf32>
    %322 = vector.shape_cast %321 : vector<1x1x128xf32> to vector<1x128xf32>
    %323 = vector.broadcast %322 : vector<1x128xf32> to vector<16x128xf32>
    %324 = arith.addf %320, %323 : vector<16x128xf32>
    %325 = arith.addf %316, %324 : vector<16x128xf32>
    %326 = arith.addf %325, %175 : vector<16x128xf32>
    %327 = arith.truncf %326 : vector<16x128xf32> to vector<16x128xbf16>
    %c0_184 = arith.constant 0 : index
    %c0_185 = arith.constant 0 : index
    %328 = vector.load %arg10[%c0_184, %c0_185] : memref<128x128xbf16, #tpu.memory_space<vmem>>, vector<128x128xbf16>
    %cst_186 = arith.constant dense<0.000000e+00> : vector<16x128xf32>
    %329 = tpu.matmul %327, %328, %cst_186 {dimension_numbers = #tpu.dot_dimension_numbers<[1], [0], [0], [1], [0, 0, 1, 1], [], []>} : vector<16x128xbf16>, vector<128x128xbf16>, vector<16x128xf32> -> vector<16x128xf32>
    %c0_187 = arith.constant 0 : index
    %c0_188 = arith.constant 0 : index
    %330 = vector.load %arg11[%c0_187, %c0_188] : memref<1x128xf32, #tpu.memory_space<vmem>>, vector<1x128xf32>
    %331 = vector.broadcast %330 : vector<1x128xf32> to vector<16x128xf32>
    %332 = arith.addf %329, %331 : vector<16x128xf32>
    %cst_189 = arith.constant 0.000000e+00 : f32
    %333 = vector.broadcast %cst_189 : f32 to vector<16x128xf32>
    %334 = arith.maximumf %332, %333 : vector<16x128xf32>
    %335 = arith.truncf %334 : vector<16x128xf32> to vector<16x128xbf16>
    %c0_190 = arith.constant 0 : index
    %c0_191 = arith.constant 0 : index
    %336 = vector.load %arg12[%c0_190, %c0_191] : memref<128x128xbf16, #tpu.memory_space<vmem>>, vector<128x128xbf16>
    %cst_192 = arith.constant dense<0.000000e+00> : vector<16x128xf32>
    %337 = tpu.matmul %335, %336, %cst_192 {dimension_numbers = #tpu.dot_dimension_numbers<[1], [0], [0], [1], [0, 0, 1, 1], [], []>} : vector<16x128xbf16>, vector<128x128xbf16>, vector<16x128xf32> -> vector<16x128xf32>
    %c0_193 = arith.constant 0 : index
    %c0_194 = arith.constant 0 : index
    %338 = vector.load %arg13[%c0_193, %c0_194] : memref<1x128xf32, #tpu.memory_space<vmem>>, vector<1x128xf32>
    %339 = vector.broadcast %338 : vector<1x128xf32> to vector<16x128xf32>
    %340 = arith.addf %337, %339 : vector<16x128xf32>
    %c0_195 = arith.constant 0 : index
    %c0_196 = arith.constant 0 : index
    %c0_197 = arith.constant 0 : index
    %341 = vector.load %arg18[%c0_195, %c0_196, %c0_197] : memref<1x16x128xf32, #tpu.memory_space<vmem>>, vector<1x16x128xf32>
    %342 = vector.shape_cast %341 : vector<1x16x128xf32> to vector<16x128xf32>
    %343 = vector.shape_cast %340 : vector<16x128xf32> to vector<1x16x128xf32>
    tpu.vector_store %arg18[%c0_195, %c0_196, %c0_197], %343 {strides = array<i32>} : memref<1x16x128xf32, #tpu.memory_space<vmem>>, vector<1x16x128xf32>,
    %cst_198 = arith.constant dense<0xFF800000> : vector<128xf32>
    %344 = vector.multi_reduction <maximumf>, %326, %cst_198 [0] : vector<16x128xf32> to vector<128xf32>
    %345 = vector.shape_cast %344 : vector<128xf32> to vector<1x128xf32>
    %346 = arith.truncf %345 : vector<1x128xf32> to vector<1x128xbf16>
    %c0_199 = arith.constant 0 : index
    %c0_200 = arith.constant 0 : index
    %347 = vector.load %arg14[%c0_199, %c0_200] : memref<128x128xbf16, #tpu.memory_space<vmem>>, vector<128x128xbf16>
    %cst_201 = arith.constant dense<0.000000e+00> : vector<1x128xf32>
    %348 = tpu.matmul %346, %347, %cst_201 {dimension_numbers = #tpu.dot_dimension_numbers<[1], [0], [0], [1], [0, 0, 1, 1], [], []>} : vector<1x128xbf16>, vector<128x128xbf16>, vector<1x128xf32> -> vector<1x128xf32>
    %c0_202 = arith.constant 0 : index
    %c0_203 = arith.constant 0 : index
    %349 = vector.load %arg15[%c0_202, %c0_203] : memref<1x128xf32, #tpu.memory_space<vmem>>, vector<1x128xf32>
    %350 = arith.addf %348, %349 : vector<1x128xf32>
    %cst_204 = arith.constant 0.000000e+00 : f32
    %351 = vector.broadcast %cst_204 : f32 to vector<1x128xf32>
    %352 = arith.maximumf %350, %351 : vector<1x128xf32>
    %353 = arith.truncf %352 : vector<1x128xf32> to vector<1x128xbf16>
    %c0_205 = arith.constant 0 : index
    %c0_206 = arith.constant 0 : index
    %354 = vector.load %arg16[%c0_205, %c0_206] : memref<128x128xbf16, #tpu.memory_space<vmem>>, vector<128x128xbf16>
    %cst_207 = arith.constant dense<0.000000e+00> : vector<1x128xf32>
    %355 = tpu.matmul %353, %354, %cst_207 {dimension_numbers = #tpu.dot_dimension_numbers<[1], [0], [0], [1], [0, 0, 1, 1], [], []>} : vector<1x128xbf16>, vector<128x128xbf16>, vector<1x128xf32> -> vector<1x128xf32>
    %c0_208 = arith.constant 0 : index
    %c0_209 = arith.constant 0 : index
    %356 = vector.load %arg17[%c0_208, %c0_209] : memref<1x128xf32, #tpu.memory_space<vmem>>, vector<1x128xf32>
    %357 = arith.addf %355, %356 : vector<1x128xf32>
    %358 = tpu.iota {dimensions = array<i32: 1>} : vector<1x128xi32>
    %c4_i32 = arith.constant 4 : i32
    %359 = vector.broadcast %c4_i32 : i32 to vector<1x128xi32>
    %360 = arith.cmpi slt, %358, %359 : vector<1x128xi32>
    %cst_210 = arith.constant -1.000000e+30 : f32
    %361 = vector.broadcast %cst_210 : f32 to vector<1x128xf32>
    %362 = arith.select %360, %357, %361 : vector<1x128xi1>, vector<1x128xf32>
    %cst_211 = arith.constant dense<0xFF800000> : vector<1xf32>
    %363 = vector.multi_reduction <maximumf>, %362, %cst_211 [1] : vector<1x128xf32> to vector<1xf32>
    %364 = vector.shape_cast %363 : vector<1xf32> to vector<1x1xf32>
    %365 = vector.broadcast %364 : vector<1x1xf32> to vector<1x128xf32>
    %366 = arith.subf %362, %365 : vector<1x128xf32>
    %367 = math.exp %366 : vector<1x128xf32>
    %cst_212 = arith.constant dense<0.000000e+00> : vector<1xf32>
    %368 = vector.multi_reduction <add>, %367, %cst_212 [1] : vector<1x128xf32> to vector<1xf32>
    %369 = vector.shape_cast %368 : vector<1xf32> to vector<1x1xf32>
    %370 = vector.broadcast %369 : vector<1x1xf32> to vector<1x128xf32>
    %371 = arith.divf %367, %370 : vector<1x128xf32>
    %c0_213 = arith.constant 0 : index
    %c0_214 = arith.constant 0 : index
    %c0_215 = arith.constant 0 : index
    %372 = vector.load %arg19[%c0_213, %c0_214, %c0_215] : memref<1x1x128xf32, #tpu.memory_space<vmem>>, vector<1x1x128xf32>
    %373 = vector.shape_cast %372 : vector<1x1x128xf32> to vector<1x128xf32>
    %374 = vector.shape_cast %371 : vector<1x128xf32> to vector<1x1x128xf32>
    tpu.vector_store %arg19[%c0_213, %c0_214, %c0_215], %374 {strides = array<i32>} : memref<1x1x128xf32, #tpu.memory_space<vmem>>, vector<1x1x128xf32>,
    return
  }
  func.func @transform_0(%arg0: i32) -> (i32, i32, i32) {
    %c0_i32 = arith.constant 0 : i32
    %c0_i32_0 = arith.constant 0 : i32
    %c0_i32_1 = arith.constant 0 : i32
    return %arg0, %c0_i32, %c0_i32_0 : i32, i32, i32
  }
  func.func @transform_1(%arg0: i32) -> (i32, i32) {
    %c0_i32 = arith.constant 0 : i32
    %c0_i32_0 = arith.constant 0 : i32
    %c0_i32_1 = arith.constant 0 : i32
    return %c0_i32, %c0_i32_0 : i32, i32
  }
  func.func @transform_2(%arg0: i32) -> (i32, i32) {
    %c0_i32 = arith.constant 0 : i32
    %c0_i32_0 = arith.constant 0 : i32
    %c0_i32_1 = arith.constant 0 : i32
    return %c0_i32, %c0_i32_0 : i32, i32
  }
  func.func @transform_3(%arg0: i32) -> (i32, i32, i32) {
    %c0_i32 = arith.constant 0 : i32
    %c0_i32_0 = arith.constant 0 : i32
    %c0_i32_1 = arith.constant 0 : i32
    %c0_i32_2 = arith.constant 0 : i32
    return %c0_i32, %c0_i32_0, %c0_i32_1 : i32, i32, i32
  }
  func.func @transform_4(%arg0: i32) -> (i32, i32, i32) {
    %c0_i32 = arith.constant 0 : i32
    %c0_i32_0 = arith.constant 0 : i32
    %c0_i32_1 = arith.constant 0 : i32
    %c0_i32_2 = arith.constant 0 : i32
    return %c0_i32, %c0_i32_0, %c0_i32_1 : i32, i32, i32
  }
  func.func @transform_5(%arg0: i32) -> (i32, i32, i32) {
    %c0_i32 = arith.constant 0 : i32
    %c0_i32_0 = arith.constant 0 : i32
    %c0_i32_1 = arith.constant 0 : i32
    %c0_i32_2 = arith.constant 0 : i32
    return %c0_i32, %c0_i32_0, %c0_i32_1 : i32, i32, i32
  }
  func.func @transform_6(%arg0: i32) -> (i32, i32, i32) {
    %c0_i32 = arith.constant 0 : i32
    %c0_i32_0 = arith.constant 0 : i32
    %c0_i32_1 = arith.constant 0 : i32
    %c0_i32_2 = arith.constant 0 : i32
    return %c0_i32, %c0_i32_0, %c0_i32_1 : i32, i32, i32
  }
  func.func @transform_7(%arg0: i32) -> (i32, i32, i32) {
    %c0_i32 = arith.constant 0 : i32
    %c0_i32_0 = arith.constant 0 : i32
    %c0_i32_1 = arith.constant 0 : i32
    %c0_i32_2 = arith.constant 0 : i32
    return %c0_i32, %c0_i32_0, %c0_i32_1 : i32, i32, i32
  }
  func.func @transform_8(%arg0: i32) -> (i32, i32, i32) {
    %c0_i32 = arith.constant 0 : i32
    %c0_i32_0 = arith.constant 0 : i32
    %c0_i32_1 = arith.constant 0 : i32
    %c0_i32_2 = arith.constant 0 : i32
    return %c0_i32, %c0_i32_0, %c0_i32_1 : i32, i32, i32
  }
  func.func @transform_9(%arg0: i32) -> (i32, i32) {
    %c0_i32 = arith.constant 0 : i32
    %c0_i32_0 = arith.constant 0 : i32
    %c0_i32_1 = arith.constant 0 : i32
    return %c0_i32, %c0_i32_0 : i32, i32
  }
  func.func @transform_10(%arg0: i32) -> (i32, i32) {
    %c0_i32 = arith.constant 0 : i32
    %c0_i32_0 = arith.constant 0 : i32
    %c0_i32_1 = arith.constant 0 : i32
    return %c0_i32, %c0_i32_0 : i32, i32
  }
  func.func @transform_11(%arg0: i32) -> (i32, i32) {
    %c0_i32 = arith.constant 0 : i32
    %c0_i32_0 = arith.constant 0 : i32
    %c0_i32_1 = arith.constant 0 : i32
    return %c0_i32, %c0_i32_0 : i32, i32
  }
  func.func @transform_12(%arg0: i32) -> (i32, i32) {
    %c0_i32 = arith.constant 0 : i32
    %c0_i32_0 = arith.constant 0 : i32
    %c0_i32_1 = arith.constant 0 : i32
    return %c0_i32, %c0_i32_0 : i32, i32
  }
  func.func @transform_13(%arg0: i32) -> (i32, i32) {
    %c0_i32 = arith.constant 0 : i32
    %c0_i32_0 = arith.constant 0 : i32
    %c0_i32_1 = arith.constant 0 : i32
    return %c0_i32, %c0_i32_0 : i32, i32
  }
  func.func @transform_14(%arg0: i32) -> (i32, i32) {
    %c0_i32 = arith.constant 0 : i32
    %c0_i32_0 = arith.constant 0 : i32
    %c0_i32_1 = arith.constant 0 : i32
    return %c0_i32, %c0_i32_0 : i32, i32
  }
  func.func @transform_15(%arg0: i32) -> (i32, i32) {
    %c0_i32 = arith.constant 0 : i32
    %c0_i32_0 = arith.constant 0 : i32
    %c0_i32_1 = arith.constant 0 : i32
    return %c0_i32, %c0_i32_0 : i32, i32
  }
  func.func @transform_16(%arg0: i32) -> (i32, i32) {
    %c0_i32 = arith.constant 0 : i32
    %c0_i32_0 = arith.constant 0 : i32
    %c0_i32_1 = arith.constant 0 : i32
    return %c0_i32, %c0_i32_0 : i32, i32
  }
  func.func @transform_17(%arg0: i32) -> (i32, i32, i32) {
    %c0_i32 = arith.constant 0 : i32
    %c0_i32_0 = arith.constant 0 : i32
    %c0_i32_1 = arith.constant 0 : i32
    return %arg0, %c0_i32, %c0_i32_0 : i32, i32, i32
  }
  func.func @transform_18(%arg0: i32) -> (i32, i32, i32) {
    %c0_i32 = arith.constant 0 : i32
    %c0_i32_0 = arith.constant 0 : i32
    %c0_i32_1 = arith.constant 0 : i32
    return %arg0, %c0_i32, %c0_i32_0 : i32, i32, i32
  }
}

</mosaic_0001>

<bundles_post_ra>
// kernel: ts_encoder_forward.1
= control target key start
LH: loop header
LB: loop body
LE: loop exit
PB: predicated region body
PF: predicated region fallthrough
CT: control target
= control target key end

     0   :  { %s6031_s0 = inlined_call_operand.vmem [shape: f32[2,16,128], index: 0, kind: input, shape index: {}]   ;;  %s6032_s1 = inlined_call_operand.vmem [shape: bf16[128,128], index: 1, kind: input, shape index: {}]   ;;  %s6033_s2 = inlined_call_operand.vmem [shape: f32[1,128], index: 2, kind: input, shape index: {}]   ;;  %s6034_s3 = inlined_call_operand.hbm [shape: bf16[12,128,128], index: 3, kind: input, shape index: {}]   ;;  %s6035_s4 = inlined_call_operand.vmem [shape: f32[4,1,128], index: 4, kind: input, shape index: {}]   ;;  %s6036_s5 = inlined_call_operand.hbm [shape: bf16[12,128,128], index: 5, kind: input, shape index: {}]   ;;  %s6037_s6 = inlined_call_operand.vmem [shape: f32[4,1,128], index: 6, kind: input, shape index: {}]   ;;  %s6038_s7 = inlined_call_operand.hbm [shape: bf16[2,128,128], index: 7, kind: input, shape index: {}]   ;;  %s6039_s8 = inlined_call_operand.vmem [shape: f32[2,1,128], index: 8, kind: input, shape index: {}]   ;;  %s6040_s9 = inlined_call_operand.hbm [shape: bf16[128,128], index: 9, kind: input, shape index: {}]   ;;  %s6041_s10 = inlined_call_operand.vmem [shape: f32[1,128], index: 10, kind: input, shape index: {}]   ;;  %s6042_s11 = inlined_call_operand.hbm [shape: bf16[128,128], index: 11, kind: input, shape index: {}]   ;;  %s6043_s12 = inlined_call_operand.vmem [shape: f32[1,128], index: 12, kind: input, shape index: {}]   ;;  %s6044_s13 = inlined_call_operand.hbm [shape: bf16[128,128], index: 13, kind: input, shape index: {}]   ;;  %s6045_s14 = inlined_call_operand.vmem [shape: f32[1,128], index: 14, kind: input, shape index: {}]   ;;  %s6046_s15 = inlined_call_operand.hbm [shape: bf16[128,128], index: 15, kind: input, shape index: {}]   ;;  %s6047_s16 = inlined_call_operand.vmem [shape: f32[1,128], index: 16, kind: input, shape index: {}]   ;;  %s6048_s17 = inlined_call_operand.hbm [shape: f32[2,16,128], index: 17, kind: output, shape index: {0}]   ;;  %s6049_s18 = inlined_call_operand.hbm [shape: f32[2,1,128], index: 18, kind: output, shape index: {1}]  }
   0x1   :  { %6060 = sst [smem:[#allocation29_spill]] %s6031_s0 }
   0x2   :  { %6061 = sst [smem:[#allocation30_spill]] %s6032_s1 }
   0x3   :  { %6062 = sst [smem:[#allocation31_spill]] %s6033_s2 }
   0x4   :  { %6063 = sst [smem:[#allocation32_spill]] %s6034_s3 }
   0x5   :  { %6064 = sst [smem:[#allocation33_spill]] %s6036_s5 }
   0x6   :  { %6065 = sst [smem:[#allocation34_spill]] %s6040_s9 }
   0x7   :  { %6066 = sst [smem:[#allocation35_spill]] %s6048_s17 }
   0x8   :  { %6067 = sst [smem:[#allocation36_spill]] %s6049_s18 }
   0x9   :  { %24 = vsyncpa [#allocation3], 0 }
   0xa   :  { %25 = vsyncpa [#allocation6], 0 }
   0xb   :  { %26 = vsyncpa [#allocation9], 0 }
   0xc   :  { %27 = vsyncpa [#allocation12], 0 }
   0xd   :  { %28 = vsyncpa [#allocation4], 0 }
   0xe   :  { %30 = vsyncpa [#allocation4 + $0x1], 0 }
   0xf   :  { %31 = vsyncpa [#allocation16], 0 }
  0x10   :  { %33 = vsyncpa [#allocation16 + $0x1], 0  ;;  %s5684_s27 = smov 0   ;;  %s5686_s28 = smov 0  }
  0x11   :  { %s5688_s29 = smov 0   ;;  %s5690_s30 = smov 0  }
  0x12 LB: > { %6068 = sst [smem:[#allocation23_spill]] %s5562_s27  ;;  %s5705_s0 = sadd.s32 4294967295, %s5574_s30   ;;  %s5574_s30 = sphi %s5690_s30, %s6094_s30   ;;  %s5570_s29 = sphi %s5688_s29, %s6096_s29   ;;  %s5566_s28 = sphi %s5686_s28, %s6098_s28   ;;  %s5562_s27 = sphi %s5684_s27, %s6097_s27  }
  0x13   : > { %6069 = sst [smem:[#allocation24_spill]] %s5570_s29  ;;  %s3806_s19 = sadd.s32 4294967294, %s5574_s30  }
  0x14   : > { %6070 = sst [smem:[#allocation25_spill]] %s5574_s30  ;;  %s5709_s1 = sadd.s32 1, %s5574_s30  }
  0x15   : > { %6071 = sst [smem:[#allocation26_spill]] %s5709_s1  ;;  %s408_s20 = sadd.s32 1, %s5570_s29 }
  0x16   : > { %s405_s21 = ssub.s32 %s5574_s30, %s5709_s1  ;;  %p418_p0 = scmp.ne.s32.totalorder %s5570_s29, %s5566_s28 }
  0x17   : > { %p406_p1 = scmp.eq.s32.totalorder %s405_s21, 0  ;;  %p419_p2 = scmp.eq.s32.totalorder %s5705_s0, 1 }
  0x18   : > { %p424_p3 = scmp.ne.s32.totalorder %s5566_s28, %s5562_s27  ;;  %p425_p4 = scmp.eq.s32.totalorder %s3806_s19, 1 }
  0x19   : > { %s5720_s22 = scalar_select %p406_p1, %s5570_s29, %s408_s20  }
  0x1a   : > { %p5722_p5 = por %p419_p2, %p418_p0  ;;  %p5726_p6 = por %p425_p4, %p424_p3 }
  0x1b   : > { %6072 = sst [smem:[#allocation27_spill]] %s5720_s22  ;;  %p3807_p7 = scmp.ge.s32.totalorder %s5574_s30, 1 }
  0x1c   : > { %s6074_s23 = scalar_select %p5726_p6, 1, 0 }
  0x1d   : > { %p458_p8 = scmp.lt.s32.totalorder %s5574_s30, 3  ;;  %p5145_p9 = scmp.eq.s32.totalorder %s5705_s0, 0 }
  0x1e   : > { %6075 = sst [smem:[#allocation28_spill]] %s6074_s23  ;;  %s5576_s1 = smov [#allocation5]  }
  0x1f   : > { %p5733_p10 = pnand %p3807_p7, %p458_p8  ;;  %s6077_s5 = sld [smem:[#allocation33_spill]] }
  0x20   : > { %s6078_s9 = sld [smem:[#allocation34_spill]]  ;;  %s494_s23 = sshll.u32 %s5576_s1, 4  ;;  %s495_s23 = int_to_ptr.vmem [resolvable:$true] %s494_s23 }
  0x21   : > { %p5116_p11 = pneg %p5733_p10  ;;  %s5577_s25 = smov 64  }
  0x22   : > { %s5578_s26 = smov 4   ;;  %s5579_s20 = smov [#allocation8]  }
  0x23   : > { %p5747_p12 = pnand %p5145_p9, %p5116_p11  ;;  %s528_s21 = sshll.u32 %s5579_s20, 4  ;;  %s529_s21 = int_to_ptr.vmem [resolvable:$true] %s528_s21 }
  0x24   : > { %s560_s27 = sshll.u32 %s6044_s13, 4  ;;  %s6080_s3 = sld [smem:[#allocation32_spill]]  ;;  %s561_s27 = int_to_ptr.hbm [resolvable:$true] %s560_s27 }
  0x25   : > { %s492_s19 = sshll.u32 %s6077_s5, 4  ;;  %s5580_s17 = smov [#allocation11]   ;;  %s493_s19 = int_to_ptr.hbm [resolvable:$true] %s492_s19 }
  0x26   : > { %s526_s22 = sshll.u32 %s6078_s9, 4  ;;  %s5581_s5 = smov [#allocation2]   ;;  %s527_s22 = int_to_ptr.hbm [resolvable:$true] %s526_s22 }
  0x27   : > { %5122 = dma.hbm_to_vmem [thread:$0]  (!%p5747_p12), %s493_s19, 12288, %s495_s23, [#allocation6], %s5577_s25, %s5577_s25, %s5578_s26  }
  0x28   : > { %5128 = dma.hbm_to_vmem [thread:$0]  (!%p5747_p12), %s527_s22, 1024, %s529_s21, [#allocation9], %s5577_s25, %s5577_s25, %s5578_s26  }
  0x29   : > { %s562_s23 = sshll.u32 %s5580_s17, 4  ;;  %s477_s9 = sshll.u32 %s5581_s5, 4  ;;  %s563_s23 = int_to_ptr.vmem [resolvable:$true] %s562_s23  ;;  %s478_s9 = int_to_ptr.vmem [resolvable:$true] %s477_s9 }
  0x2a   : > { %s475_s18 = sshll.u32 %s6080_s3, 4  ;;  %s509_s22 = sshll.u32 %s6038_s7, 4  ;;  %s476_s18 = int_to_ptr.hbm [resolvable:$true] %s475_s18  ;;  %s510_s22 = int_to_ptr.hbm [resolvable:$true] %s509_s22 }
  0x2b   : > { %5134 = dma.hbm_to_vmem [thread:$0]  (!%p5747_p12), %s561_s27, 1024, %s563_s23, [#allocation12], %s5577_s25, %s5577_s25, %s5578_s26  }
  0x2c   : > { %5119 = dma.hbm_to_vmem [thread:$0]  (!%p5747_p12), %s476_s18, 12288, %s478_s9, [#allocation3], %s5577_s25, %s5577_s25, %s5578_s26  }
  0x2d   : > { %s543_s21 = sshll.u32 %s6042_s11, 4  ;;  %s5582_s27 = smov [#allocation7]   ;;  %s544_s21 = int_to_ptr.hbm [resolvable:$true] %s543_s21 }
  0x2e   : > { %s511_s1 = sshll.u32 %s5582_s27, 4  ;;  %s5583_s23 = smov [#allocation10]   ;;  %s512_s1 = int_to_ptr.vmem [resolvable:$true] %s511_s1 }
  0x2f   : > { %5125 = dma.hbm_to_vmem [thread:$0]  (!%p5747_p12), %s510_s22, 2048, %s512_s1, [#allocation6], %s5577_s25, %s5577_s25, %s5578_s26  }
  0x30   : > { %s545_s5 = sshll.u32 %s5583_s23, 4  ;;  %s577_s18 = sshll.u32 %s6046_s15, 4  ;;  %s546_s5 = int_to_ptr.vmem [resolvable:$true] %s545_s5  ;;  %s578_s18 = int_to_ptr.hbm [resolvable:$true] %s577_s18 }
  0x31   : > { %5131 = dma.hbm_to_vmem [thread:$0]  (!%p5747_p12), %s544_s21, 1024, %s546_s5, [#allocation9], %s5577_s25, %s5577_s25, %s5578_s26  }
  0x32   : > { %s5584_s9 = smov [#allocation13]   ;;  %606 = sbr.rel (%p5733_p10) target bundleno = 2290 (0x8f2), region = 88 }
  0x33   : > { %s579_s17 = sshll.u32 %s5584_s9, 4  ;;  %s580_s17 = int_to_ptr.vmem [resolvable:$true] %s579_s17 }
  0x34   : > { %5137 = dma.hbm_to_vmem [thread:$0]  (!%p5747_p12), %s578_s18, 1024, %s580_s17, [#allocation12], %s5577_s25, %s5577_s25, %s5578_s26  }
  0x37   : > { %5537 = dma.done.wait (%p5145_p9), [#allocation3], 12288  }
  0x38   : > { %5539 = vsyncadd (%p5145_p9), [#allocation3], 4294955008 }
  0x39   : > { %5541 = dma.done.wait (%p5145_p9), [#allocation6], 14336  }
  0x3a   : > { %5543 = vsyncadd (%p5145_p9), [#allocation6], 4294952960 }
  0x3b   : > { %5545 = dma.done.wait (%p5145_p9), [#allocation9], 2048  }
  0x3c   : > { %5547 = vsyncadd (%p5145_p9), [#allocation9], 4294965248 }
  0x3d   : > { %5549 = dma.done.wait (%p5145_p9), [#allocation12], 2048  }
  0x3e   : > { %5551 = vsyncadd (%p5145_p9), [#allocation12], 4294965248  ;;  %p695_p13 = scmp.lt.s32.totalorder %s5705_s0, 1  ;;  %s6081_s22 = sld [smem:[#allocation29_spill]]  ;;  %v5585_v4 = vmov 0.0   ;;  %vm5586_vm3 = vmmov 1  }
  0x3f   : > { %s6082_s1 = sld [smem:[#allocation30_spill]]  ;;  %v4850_v18 = vld [vmem:[#allocation2 + $0x38] sm:$0xff]  ;;  %v4849_v21 = vld [vmem:[#allocation2 + $0x30] sm:$0xff]  ;;  %v4848_v24 = vld [vmem:[#allocation2 + $0x28] sm:$0xff]  ;;  %vm1062_vm8 = vcmask 1040384   ;;  %vm1073_vm9 = vcmask 1046528  }
  0x40   : > { %s696_s29 = scalar_select %p695_p13, %s5705_s0, 1  ;;  %v4858_v19 = vld [vmem:[#allocation2 + $0x78] sm:$0xff]  ;;  %888 = vmatpush.bf16.msra.mxu1 %v4850_v18  ;;  %v4857_v22 = vld [vmem:[#allocation2 + $0x70] sm:$0xff]  ;;  %v4856_v25 = vld [vmem:[#allocation2 + $0x68] sm:$0xff]  ;;  %vm1629_vm10 = vcmask 1041408   ;;  %vm1640_vm11 = vcmask 1045504  }
  0x41   : > { %v4866_v20 = vld [vmem:[#allocation2 + $0xb8] sm:$0xff]  ;;  %967 = vmatpush.bf16.msra.mxu2 %v4858_v19  ;;  %v4865_v23 = vld [vmem:[#allocation2 + $0xb0] sm:$0xff]  ;;  %v4864_v26 = vld [vmem:[#allocation2 + $0xa8] sm:$0xff]  ;;  %s6087_s5 = sld [smem:[#allocation31_spill]]  ;;  %s5083_s18 = sshll.u32 %s5705_s0, 4 }
  0x42   : > { %s4834_s24 = sshll.u32 %s696_s29, 4  ;;  %1046 = vmatpush.bf16.msra.mxu3 %v4866_v20  ;;  %v4847_v27 = vld [vmem:[#allocation2 + $0x20] sm:$0xff]  ;;  %v4846_v30 = vld [vmem:[#allocation2 + $0x18] sm:$0xff]  ;;  %v4845_v33 = vld [vmem:[#allocation2 + $0x10] sm:$0xff]  ;;  %s6088_s29 = sld [smem:[#allocation35_spill]] }
  0x43   : > { %v4855_v28 = vld [vmem:[#allocation2 + $0x60] sm:$0xff]  ;;  %v4854_v31 = vld [vmem:[#allocation2 + $0x58] sm:$0xff]  ;;  %v4853_v34 = vld [vmem:[#allocation2 + $0x50] sm:$0xff] }
  0x44   : > { %s699_s30 = scalar_lea.vmem %s6081_s22, %s4834_s24  ;;  %889 = vmatpush.bf16.msra.mxu1 %v4849_v21  ;;  %v4863_v29 = vld [vmem:[#allocation2 + $0xa0] sm:$0xff]  ;;  %v4862_v32 = vld [vmem:[#allocation2 + $0x98] sm:$0xff]  ;;  %v4861_v35 = vld [vmem:[#allocation2 + $0x90] sm:$0xff]  ;;  %s5972_s22 = sand.u32 1, %s5566_s28  }
  0x45   : > { %v700_v0 = vld [vmem:[%s699_s30] sm:$0xff]  ;;  %v701_v1 = vld [vmem:[%s699_s30 + $0x8] sm:$0xff]  ;;  %v4842_v2 = vld [vmem:[%s6082_s1 + $0x38] sm:$0xff]  ;;  %968 = vmatpush.bf16.msra.mxu2 %v4857_v22  ;;  %s3824_s30 = sshll.u32 %s5972_s22, 4 }
  0x46   : > { %vm702_vm0 = vcmp.ne.f32.partialorder %v700_v0, %v700_v0  ;;  %v3860_v3 = vpack.c.bf16 %v701_v1, %v700_v0  ;;  %789 = vmatpush.bf16.msra.mxu0 %v4842_v2  ;;  %v4841_v6 = vld [vmem:[%s6082_s1 + $0x30] sm:$0xff]  ;;  %v4840_v7 = vld [vmem:[%s6082_s1 + $0x28] sm:$0xff]  ;;  %vm703_vm1 = vcmp.ne.f32.partialorder %v701_v1, %v701_v1  ;;  %v4839_v9 = vld [vmem:[%s6082_s1 + $0x20] sm:$0xff]  ;;  %1047 = vmatpush.bf16.msra.mxu3 %v4865_v23  ;;  %s688_s23 = scalar_lea.vmem [#allocation14], %s3824_s30  ;;  %s3615_s30 = scalar_lea.sflag [#allocation4], %s5972_s22 }
  0x47   : > { %v704_v5 = vsel %vm702_vm0, 1.0, %v5585_v4  ;;  %v705_v8 = vsel %vm703_vm1, 1.0, %v5585_v4  ;;  %v4838_v10 = vld [vmem:[%s6082_s1 + $0x18] sm:$0xff]  ;;  %v4837_v11 = vld [vmem:[%s6082_s1 + $0x10] sm:$0xff]  ;;  %v4836_v12 = vld [vmem:[%s6082_s1 + $0x8] sm:$0xff]  ;;  %s3631_s20 = sshll.u32 %s688_s23, 4  ;;  %s3632_s20 = int_to_ptr.vmem [resolvable:$true] %s3631_s20 }
  0x48   : > { %706 = vmax.xlane.f32.xlu0 %v704_v5  ;;  %v4835_v13 = vld [vmem:[%s6082_s1] sm:$0xff]  ;;  %890 = vmatpush.bf16.msra.mxu1 %v4848_v24  ;;  %v4844_v36 = vld [vmem:[#allocation2 + $0x8] sm:$0xff]  ;;  %v4874_v4 = vld [vmem:[#allocation5 + $0x38] sm:$0xff]  ;;  %s6089_s24 = smov %s6088_s29  ;;  %s3630_s25 = scalar_lea.hbm %s6088_s29, %s5083_s18 }
  0x49   : > { %969 = vmatpush.bf16.msra.mxu2 %v4856_v25  ;;  %v4852_v37 = vld [vmem:[#allocation2 + $0x48] sm:$0xff]  ;;  %v5205_v39 = vld [vmem:[%s6087_s5] ss:$0 sm:$0xff]  ;;  %v4882_v5 = vld [vmem:[#allocation5 + $0x78] sm:$0xff]  ;;  %s3633_s26 = sshll.u32 %s3630_s25, 4  ;;  %s3634_s26 = int_to_ptr.hbm [resolvable:$true] %s3633_s26 }
  0x4a   : > { %790 = vmatpush.bf16.msra.mxu0 %v4841_v6  ;;  %1048 = vmatpush.bf16.msra.mxu3 %v4864_v26  ;;  %v4860_v38 = vld [vmem:[#allocation2 + $0x88] sm:$0xff]  ;;  %v4843_v40 = vld [vmem:[#allocation2] sm:$0xff]  ;;  %v4890_v6 = vld [vmem:[#allocation5 + $0xb8] sm:$0xff]  ;;  %s5478_s21 = sshra.s32 %s3634_s26, 4  ;;  %s5479_s21 = int_to_ptr.hbm [resolvable:$true] %s5478_s21 }
  0x4b   : > { %v4851_v41 = vld [vmem:[#allocation2 + $0x40] sm:$0xff]  ;;  %v4870_v16 = vld [vmem:[#allocation5 + $0x18] sm:$0xff]  ;;  %v4869_v20 = vld [vmem:[#allocation5 + $0x10] sm:$0xff]  ;;  %s5480_s27 = scalar_lea.hbm %s5479_s21, 16  ;;  %p5485_p3 = scmp.lt.s32.totalorder %s5479_s21, %s6089_s24 }
  0x4c   : > { %891 = vmatpush.bf16.msra.mxu1 %v4847_v27  ;;  %v4859_v42 = vld [vmem:[#allocation2 + $0x80] sm:$0xff]  ;;  %v4878_v17 = vld [vmem:[#allocation5 + $0x58] sm:$0xff]  ;;  %v4877_v21 = vld [vmem:[#allocation5 + $0x50] sm:$0xff]  ;;  %p5481_p0 = scmp.ne.s32.totalorder %s5479_s21, %s5480_s27 }
  0x4d   : > { %970 = vmatpush.bf16.msra.mxu2 %v4855_v28  ;;  %v4886_v18 = vld [vmem:[#allocation5 + $0x98] sm:$0xff]  ;;  %v4885_v22 = vld [vmem:[#allocation5 + $0x90] sm:$0xff]  ;;  %v4868_v23 = vld [vmem:[#allocation5 + $0x8] sm:$0xff] }
  0x4e   : > { %791 = vmatpush.bf16.msra.mxu0 %v4840_v7  ;;  %1049 = vmatpush.bf16.msra.mxu3 %v4863_v29  ;;  %v4873_v7 = vld [vmem:[#allocation5 + $0x30] sm:$0xff]  ;;  %v4876_v24 = vld [vmem:[#allocation5 + $0x48] sm:$0xff]  ;;  %v4867_v29 = vld [vmem:[#allocation5] sm:$0xff]  ;;  %p5482_p1 = pnand %p5481_p0, %p5722_p5 }
  0x4f   : > { %v4884_v26 = vld [vmem:[#allocation5 + $0x88] sm:$0xff] }
  0x50   : > { %708 = vmax.xlane.f32.xlu0 %v705_v8  ;;  %892 = vmatpush.bf16.msra.mxu1 %v4846_v30  ;;  %v4881_v8 = vld [vmem:[#allocation5 + $0x70] sm:$0xff]  ;;  %v4875_v30 = vld [vmem:[#allocation5 + $0x40] sm:$0xff]  ;;  %p5483_p2 = pneg %p5482_p1 }
  0x51   : > { %971 = vmatpush.bf16.msra.mxu2 %v4854_v31 }
  0x52   : > { %792 = vmatpush.bf16.msra.mxu0 %v4839_v9  ;;  %1050 = vmatpush.bf16.msra.mxu3 %v4862_v32  ;;  %v4889_v9 = vld [vmem:[#allocation5 + $0xb0] sm:$0xff]  ;;  %v4883_v32 = vld [vmem:[#allocation5 + $0x80] sm:$0xff] }
  0x54   : > { %893 = vmatpush.bf16.msra.mxu1 %v4845_v33 }
  0x55   : > { %972 = vmatpush.bf16.msra.mxu2 %v4853_v34 }
  0x56   : > { %793 = vmatpush.bf16.msra.mxu0 %v4838_v10  ;;  %1051 = vmatpush.bf16.msra.mxu3 %v4861_v35  ;;  %v4872_v10 = vld [vmem:[#allocation5 + $0x28] sm:$0xff] }
  0x58   : > { %894 = vmatpush.bf16.msra.mxu1 %v4844_v36 }
  0x59   : > { %973 = vmatpush.bf16.msra.mxu2 %v4852_v37 }
  0x5a   : > { %794 = vmatpush.bf16.msra.mxu0 %v4837_v11  ;;  %1052 = vmatpush.bf16.msra.mxu3 %v4860_v38  ;;  %v4880_v11 = vld [vmem:[#allocation5 + $0x68] sm:$0xff] }
  0x5c   : > { %895 = vmatpush.bf16.msra.mxu1 %v4843_v40 }
  0x5d   : > { %974 = vmatpush.bf16.msra.mxu2 %v4851_v41 }
  0x5e   : > { %795 = vmatpush.bf16.msra.mxu0 %v4836_v12  ;;  %1053 = vmatpush.bf16.msra.mxu3 %v4859_v42  ;;  %v4888_v12 = vld [vmem:[#allocation5 + $0xa8] sm:$0xff]  ;;  %v5206_v42 = vld [vmem:[%s6035_s4] ss:$0 sm:$0xff] }
  0x60   : > { %1250 = vmatpush.bf16.msrb.mxu1 %v4882_v5 }
  0x61   : > { %1329 = vmatpush.bf16.msrb.mxu2 %v4890_v6  ;;  %v4914_v6 = vld [vmem:[#allocation2 + $0x178] sm:$0xff] }
  0x62   : > { %796 = vmatpush.bf16.msra.mxu0 %v4835_v13  ;;  %v4871_v13 = vld [vmem:[#allocation5 + $0x20] sm:$0xff] }
  0x64   : > { %1251 = vmatpush.bf16.msrb.mxu1 %v4881_v8  ;;  %v4912_v8 = vld [vmem:[#allocation2 + $0x168] sm:$0xff] }
  0x65   : > { %1330 = vmatpush.bf16.msrb.mxu2 %v4889_v9  ;;  %v4911_v9 = vld [vmem:[#allocation2 + $0x160] sm:$0xff] }
  0x66   : > { %1171 = vmatpush.bf16.msrb.mxu0 %v4874_v4 }
  0x68   : > { %1252 = vmatpush.bf16.msrb.mxu1 %v4880_v11  ;;  %v4906_v11 = vld [vmem:[#allocation2 + $0x138] sm:$0xff] }
  0x69   : > { %1331 = vmatpush.bf16.msrb.mxu2 %v4888_v12  ;;  %v4910_v12 = vld [vmem:[#allocation2 + $0x158] sm:$0xff] }
  0x6a   : > { %1172 = vmatpush.bf16.msrb.mxu0 %v4873_v7  ;;  %v4913_v7 = vld [vmem:[#allocation2 + $0x170] sm:$0xff] }
  0x6e   : > { %1173 = vmatpush.bf16.msrb.mxu0 %v4872_v10  ;;  %v4898_v10 = vld [vmem:[#allocation2 + $0xf8] sm:$0xff] }
  0x6f   : > { %1455 = vmatpush.bf16.msrb.mxu3 %v4898_v10 }
  0x72   : > { %1174 = vmatpush.bf16.msrb.mxu0 %v4871_v13  ;;  %v4897_v13 = vld [vmem:[#allocation2 + $0xf0] sm:$0xff] }
  0x73   : > { %1456 = vmatpush.bf16.msrb.mxu3 %v4897_v13 }
  0x76   : > { %1175 = vmatpush.bf16.msrb.mxu0 %v4870_v16  ;;  %v4896_v16 = vld [vmem:[#allocation2 + $0xe8] sm:$0xff] }
  0x77   : > { %1457 = vmatpush.bf16.msrb.mxu3 %v4896_v16 }
  0x7a   : > { %1176 = vmatpush.bf16.msrb.mxu0 %v4869_v20  ;;  %v4903_v20 = vld [vmem:[#allocation2 + $0x120] sm:$0xff] }
  0x7e   : > { %1177 = vmatpush.bf16.msrb.mxu0 %v4868_v23  ;;  %v4902_v23 = vld [vmem:[#allocation2 + $0x118] sm:$0xff] }
  0x82   : > { %1178 = vmatpush.bf16.msrb.mxu0 %v4867_v29 }
  0xbb   : > { %v707_v14 = vpop.xlane.xlu0 %706 }
  0xbc   : > { %vm710_vm2 = vcmp.gt.f32.partialorder %v707_v14, 0.0  ;;  %v4879_v14 = vld [vmem:[#allocation5 + $0x60] sm:$0xff] }
  0xbd   : > { %vm5848_vm4 = vmxor %vm710_vm2, %vm5586_vm3  ;;  %1253 = vmatpush.bf16.msrb.mxu1 %v4879_v14  ;;  %v4905_v14 = vld [vmem:[#allocation2 + $0x130] sm:$0xff] }
  0xc1   : > { %1254 = vmatpush.bf16.msrb.mxu1 %v4878_v17  ;;  %v4904_v17 = vld [vmem:[#allocation2 + $0x128] sm:$0xff] }
  0xc3   : > { %v709_v15 = vpop.xlane.xlu0 %708 }
  0xc4   : > { %vm711_vm5 = vcmp.gt.f32.partialorder %v709_v15, 0.0  ;;  %v4887_v15 = vld [vmem:[#allocation5 + $0xa0] sm:$0xff] }
  0xc5   : > { %vm5852_vm6 = vmxor %vm711_vm5, %vm5586_vm3  ;;  %1332 = vmatpush.bf16.msrb.mxu2 %v4887_v15  ;;  %1255 = vmatpush.bf16.msrb.mxu1 %v4877_v21  ;;  %v4909_v15 = vld [vmem:[#allocation2 + $0x150] sm:$0xff]  ;;  %v4907_v21 = vld [vmem:[#allocation2 + $0x140] sm:$0xff] }
  0xc6   : > { %vm3859_vm7 = vmpackc.low %vm5852_vm6, %vm5848_vm4 }
  0xc7   : > { %3861 = vmatmul.msk.bf16.vlgmr.msra.gmra.mxu0 %vm3859_vm7, %v3860_v3 }
  0xc8   : > { %1534 = vmatpush.bf16.msra.mxu0 %v4906_v11 }
  0xc9   : > { %1333 = vmatpush.bf16.msrb.mxu2 %v4886_v18  ;;  %1256 = vmatpush.bf16.msrb.mxu1 %v4876_v24  ;;  %v4908_v18 = vld [vmem:[#allocation2 + $0x148] sm:$0xff] }
  0xcc   : > { %1535 = vmatpush.bf16.msra.mxu0 %v4905_v14 }
  0xcd   : > { %1334 = vmatpush.bf16.msrb.mxu2 %v4885_v22  ;;  %1257 = vmatpush.bf16.msrb.mxu1 %v4875_v30  ;;  %v4894_v22 = vld [vmem:[#allocation2 + $0xd8] sm:$0xff] }
  0xd0   : > { %1536 = vmatpush.bf16.msra.mxu0 %v4904_v17 }
  0xd1   : > { %1335 = vmatpush.bf16.msrb.mxu2 %v4884_v26  ;;  %v4893_v26 = vld [vmem:[#allocation2 + $0xd0] sm:$0xff] }
  0xd4   : > { %1537 = vmatpush.bf16.msra.mxu0 %v4903_v20  ;;  %v4930_v20 = vld [vmem:[#allocation5 + $0x138] sm:$0xff] }
  0xd5   : > { %1336 = vmatpush.bf16.msrb.mxu2 %v4883_v32  ;;  %v4900_v32 = vld [vmem:[#allocation2 + $0x108] sm:$0xff] }
  0xd8   : > { %1538 = vmatpush.bf16.msra.mxu0 %v4902_v23  ;;  %v4929_v23 = vld [vmem:[#allocation5 + $0x130] sm:$0xff] }
 0x144   : > { %v798_v43 = vpop.f32.mrf.mxu0 }
 0x145   : > { %v799_v44 = vadd.f32 %v5205_v39, %v798_v43 }
 0x147   : > { %v5865_v45 = vsel %vm5848_vm4, %v799_v44, 0.0 }
 0x148   : > { %v805_v46 = vmul.f32 %v5865_v45, %v5865_v45 }
 0x14a   : > { %v807_v47 = vmul.f32 %v805_v46, %v5865_v45 }
 0x14c   : > { %v809_v48 = vmul.f32 0.044715, %v807_v47  ;;  %v800_v49 = vpop.f32.mrf.mxu0 }
 0x14d   : > { %v801_v50 = vadd.f32 %v5205_v39, %v800_v49 }
 0x14e   : > { %v811_v51 = vadd.f32 %v809_v48, %v5865_v45 }
 0x14f   : > { %v5873_v52 = vsel %vm5852_vm6, %v801_v50, 0.0 }
 0x150   : > { %v806_v53 = vmul.f32 %v5873_v52, %v5873_v52  ;;  %v813_v54 = vmul.f32 0.7978846, %v811_v51 }
 0x152   : > { %v808_v55 = vmul.f32 %v806_v53, %v5873_v52  ;;  %5218 = vtanh.f32 %v813_v54 }
 0x154   : > { %v810_v56 = vmul.f32 0.044715, %v808_v55 }
 0x156   : > { %v812_v57 = vadd.f32 %v810_v56, %v5873_v52 }
 0x158   : > { %v814_v58 = vmul.f32 0.7978846, %v812_v57  ;;  %v5219_v59 = vpop.eup %5218 }
 0x159   : > { %v817_v60 = vadd.f32 1.0, %v5219_v59 }
 0x15a   : > { %5220 = vtanh.f32 %v814_v58 }
 0x15b   : > { %v819_v63 = vmul.f32 0.5, %v817_v60 }
 0x15d   : > { %v821_v1 = vmul.f32 %v819_v63, %v5865_v45 }
 0x160   : > { %v5221_v61 = vpop.eup %5220 }
 0x161   : > { %v818_v62 = vadd.f32 1.0, %v5221_v61 }
 0x163   : > { %v820_v0 = vmul.f32 0.5, %v818_v62 }
 0x165   : > { %v822_v2 = vmul.f32 %v820_v0, %v5873_v52 }
 0x167   : > { %v823_v3 = vpack.c.bf16 %v822_v2, %v821_v1 }
 0x169   : > { %896 = vmatmul.bf16.vlgmr.msra.gmra.mxu1 %v823_v3  ;;  %975 = vmatmul.bf16.vlgmr.msra.gmra.mxu2 %v823_v3 }
 0x16a   : > { %1054 = vmatmul.bf16.vlgmr.msra.gmra.mxu3 %v823_v3  ;;  %1613 = vmatpush.bf16.msra.mxu1 %v4914_v6 }
 0x16e   : > { %1614 = vmatpush.bf16.msra.mxu1 %v4913_v7 }
 0x172   : > { %1615 = vmatpush.bf16.msra.mxu1 %v4912_v8 }
 0x176   : > { %1616 = vmatpush.bf16.msra.mxu1 %v4911_v9 }
 0x17a   : > { %1617 = vmatpush.bf16.msra.mxu1 %v4910_v12 }
 0x17e   : > { %1618 = vmatpush.bf16.msra.mxu1 %v4909_v15 }
 0x182   : > { %1619 = vmatpush.bf16.msra.mxu1 %v4908_v18 }
 0x186   : > { %1620 = vmatpush.bf16.msra.mxu1 %v4907_v21  ;;  %v4938_v21 = vld [vmem:[#allocation5 + $0x178] sm:$0xff] }
 0x1e6   : > { %v897_v19 = vpop.f32.mrf.mxu1 }
 0x1e7   : > { %v1063_v33 = vrot.slane %v897_v19, 7  ;;  %v4895_v19 = vld [vmem:[#allocation2 + $0xe0] sm:$0xff] }
 0x1e8   : > { %1458 = vmatpush.bf16.msrb.mxu3 %v4895_v19  ;;  %v4922_v19 = vld [vmem:[#allocation5 + $0xf8] sm:$0xff] }
 0x1e9   : > { %v1068_v38 = vsel %vm1062_vm8, 0.0, %v1063_v33  ;;  %1740 = vmatpush.bf16.msra.mxu2 %v4922_v19 }
 0x1ec   : > { %v976_v25 = vpop.f32.mrf.mxu2  ;;  %1459 = vmatpush.bf16.msrb.mxu3 %v4894_v22  ;;  %v4921_v22 = vld [vmem:[#allocation5 + $0xf0] sm:$0xff] }
 0x1ed   : > { %v1055_v27 = vpop.f32.mrf.mxu3  ;;  %v1069_v41 = vadd.f32 %v1068_v38, %v976_v25  ;;  %v4946_v25 = vld [vmem:[#allocation7 + $0x38] sm:$0xff]  ;;  %v4899_v38 = vld [vmem:[#allocation2 + $0x100] sm:$0xff]  ;;  %1741 = vmatpush.bf16.msra.mxu2 %v4921_v22 }
 0x1ee   : > { %v899_v28 = vpop.f32.mrf.mxu1  ;;  %v1074_v39 = vrot.slane %v1055_v27, 1  ;;  %v4901_v27 = vld [vmem:[#allocation2 + $0x110] sm:$0xff]  ;;  %v4962_v22 = vld [vmem:[#allocation2 + $0x1f8] sm:$0xff] }
 0x1ef   : > { %v1064_v31 = vrot.slane %v899_v28, 7  ;;  %v4945_v28 = vld [vmem:[#allocation7 + $0x30] sm:$0xff]  ;;  %1539 = vmatpush.bf16.msra.mxu0 %v4901_v27  ;;  %v4936_v27 = vld [vmem:[#allocation5 + $0x168] sm:$0xff] }
 0x1f0   : > { %1460 = vmatpush.bf16.msrb.mxu3 %v4893_v26  ;;  %v4928_v26 = vld [vmem:[#allocation5 + $0x128] sm:$0xff] }
 0x1f1   : > { %v1065_v35 = vsel %vm1062_vm8, %v1063_v33, %v1064_v31  ;;  %v4892_v31 = vld [vmem:[#allocation2 + $0xc8] sm:$0xff] }
 0x1f3   : > { %1540 = vmatpush.bf16.msra.mxu0 %v4900_v32  ;;  %v4926_v32 = vld [vmem:[#allocation5 + $0x118] sm:$0xff] }
 0x1f4   : > { %v978_v34 = vpop.f32.mrf.mxu2  ;;  %1461 = vmatpush.bf16.msrb.mxu3 %v4892_v31  ;;  %v4918_v31 = vld [vmem:[#allocation5 + $0xd8] sm:$0xff] }
 0x1f5   : > { %v1070_v36 = vadd.f32 %v1065_v35, %v978_v34  ;;  %v1057_v37 = vpop.f32.mrf.mxu3  ;;  %v4944_v34 = vld [vmem:[#allocation7 + $0x28] sm:$0xff] }
 0x1f6   : > { %v1075_v40 = vrot.slane %v1057_v37, 1  ;;  %v4891_v37 = vld [vmem:[#allocation2 + $0xc0] sm:$0xff] }
 0x1f7   : > { %1541 = vmatpush.bf16.msra.mxu0 %v4899_v38 }
 0x1f8   : > { %v1076_v43 = vsel %vm1073_vm9, %v1074_v39, %v1075_v40  ;;  %v1079_v44 = vsel %vm1073_vm9, %v1075_v40, 0.0  ;;  %v4943_v39 = vld [vmem:[#allocation7 + $0x20] sm:$0xff]  ;;  %1462 = vmatpush.bf16.msrb.mxu3 %v4891_v37  ;;  %v4933_v37 = vld [vmem:[#allocation5 + $0x150] sm:$0xff] }
 0x1f9   : > { %v1080_v46 = vadd.f32 %v1076_v43, %v1069_v41  ;;  %v1081_v47 = vadd.f32 %v1079_v44, %v1070_v36 }
 0x1fb   : > { %v1086_v48 = vadd.f32 %v5206_v42, %v1080_v46  ;;  %v1087_v49 = vadd.f32 %v5206_v42, %v1081_v47 }
 0x1fc   : > { %1819 = vmatpush.bf16.msra.mxu3 %v4930_v20 }
 0x1fd   : > { %v1089_v50 = vmul.f32 %v1087_v49, %v1087_v49  ;;  %v1088_v51 = vmul.f32 %v1086_v48, %v1086_v48 }
 0x1ff   : > { %v1091_v53 = vmul.f32 %v1089_v50, %v1087_v49  ;;  %v1090_v54 = vmul.f32 %v1088_v51, %v1086_v48 }
 0x200   : > { %1820 = vmatpush.bf16.msra.mxu3 %v4929_v23  ;;  %v4970_v23 = vld [vmem:[#allocation2 + $0x238] sm:$0xff] }
 0x201   : > { %v1092_v55 = vmul.f32 0.044715, %v1090_v54  ;;  %v1093_v56 = vmul.f32 0.044715, %v1091_v53 }
 0x203   : > { %v1094_v57 = vadd.f32 %v1092_v55, %v1086_v48  ;;  %v1095_v58 = vadd.f32 %v1093_v56, %v1087_v49  ;;  %v4942_v55 = vld [vmem:[#allocation7 + $0x18] sm:$0xff] }
 0x204   : > { %1821 = vmatpush.bf16.msra.mxu3 %v4928_v26  ;;  %v4969_v26 = vld [vmem:[#allocation2 + $0x230] sm:$0xff] }
 0x205   : > { %v1096_v59 = vmul.f32 0.7978846, %v1094_v57  ;;  %v1097_v60 = vmul.f32 0.7978846, %v1095_v58  ;;  %v4941_v58 = vld [vmem:[#allocation7 + $0x10] sm:$0xff] }
 0x207   : > { %5222 = vtanh.f32 %v1096_v59 }
 0x208   : > { %5224 = vtanh.f32 %v1097_v60 }
 0x20d   : > { %v5223_v61 = vpop.eup %5222 }
 0x20e   : > { %v5225_v62 = vpop.eup %5224  ;;  %v1100_v63 = vadd.f32 1.0, %v5223_v61 }
 0x20f   : > { %v1101_v0 = vadd.f32 1.0, %v5225_v62 }
 0x210   : > { %v1102_v1 = vmul.f32 0.5, %v1100_v63  ;;  %v4940_v63 = vld [vmem:[#allocation7 + $0x8] sm:$0xff] }
 0x211   : > { %v1103_v2 = vmul.f32 0.5, %v1101_v0 }
 0x212   : > { %v1104_v3 = vmul.f32 %v1102_v1, %v1086_v48 }
 0x213   : > { %v1105_v4 = vmul.f32 %v1103_v2, %v1087_v49  ;;  %v5207_v49 = vld [vmem:[%s6037_s6] ss:$0 sm:$0xff] }
 0x215   : > { %v1106_v5 = vpack.c.bf16 %v1105_v4, %v1104_v3  ;;  %v4939_v4 = vld [vmem:[#allocation7] sm:$0xff] }
 0x217   : > { %1179 = vmatmul.bf16.vlgmr.msrb.gmra.mxu0 %v1106_v5  ;;  %1258 = vmatmul.bf16.vlgmr.msrb.gmra.mxu1 %v1106_v5 }
 0x218   : > { %1337 = vmatmul.bf16.vlgmr.msrb.gmra.mxu2 %v1106_v5  ;;  %2008 = vmatpush.bf16.msrb.mxu1 %v4946_v25  ;;  %v4920_v25 = vld [vmem:[#allocation5 + $0xe8] sm:$0xff] }
 0x219   : > { %1898 = vmatpush.bf16.msrb.mxu0 %v4938_v21  ;;  %1742 = vmatpush.bf16.msra.mxu2 %v4920_v25  ;;  %v4954_v21 = vld [vmem:[#allocation2 + $0x1b8] sm:$0xff]  ;;  %v4961_v25 = vld [vmem:[#allocation2 + $0x1f0] sm:$0xff] }
 0x21c   : > { %2009 = vmatpush.bf16.msrb.mxu1 %v4945_v28  ;;  %v4919_v28 = vld [vmem:[#allocation5 + $0xe0] sm:$0xff] }
 0x21d   : > { %1743 = vmatpush.bf16.msra.mxu2 %v4919_v28  ;;  %v4960_v28 = vld [vmem:[#allocation2 + $0x1e8] sm:$0xff] }
 0x220   : > { %2010 = vmatpush.bf16.msrb.mxu1 %v4944_v34 }
 0x221   : > { %1744 = vmatpush.bf16.msra.mxu2 %v4918_v31  ;;  %v4959_v31 = vld [vmem:[#allocation2 + $0x1e0] sm:$0xff] }
 0x224   : > { %2011 = vmatpush.bf16.msrb.mxu1 %v4943_v39 }
 0x228   : > { %2012 = vmatpush.bf16.msrb.mxu1 %v4942_v55  ;;  %v4931_v55 = vld [vmem:[#allocation5 + $0x140] sm:$0xff] }
 0x22c   : > { %2013 = vmatpush.bf16.msrb.mxu1 %v4941_v58 }
 0x230   : > { %2014 = vmatpush.bf16.msrb.mxu1 %v4940_v63 }
 0x234   : > { %2015 = vmatpush.bf16.msrb.mxu1 %v4939_v4 }
 0x294   : > { %v1180_v24 = vpop.f32.mrf.mxu0  ;;  %v1259_v29 = vpop.f32.mrf.mxu1 }
 0x295   : > { %v1345_v35 = vrot.slane %v1180_v24, 7  ;;  %v4937_v24 = vld [vmem:[#allocation5 + $0x170] sm:$0xff] }
 0x296   : > { %1899 = vmatpush.bf16.msrb.mxu0 %v4937_v24  ;;  %v4953_v24 = vld [vmem:[#allocation2 + $0x1b0] sm:$0xff] }
 0x297   : > { %v1350_v40 = vsel %vm1062_vm8, 0.0, %v1345_v35 }
 0x298   : > { %v1351_v47 = vadd.f32 %v1350_v40, %v1259_v29  ;;  %v4927_v29 = vld [vmem:[#allocation5 + $0x120] sm:$0xff] }
 0x299   : > { %1822 = vmatpush.bf16.msra.mxu3 %v4927_v29  ;;  %v4968_v29 = vld [vmem:[#allocation2 + $0x228] sm:$0xff] }
 0x29a   : > { %1900 = vmatpush.bf16.msrb.mxu0 %v4936_v27  ;;  %v4952_v27 = vld [vmem:[#allocation2 + $0x1a8] sm:$0xff] }
 0x29b   : > { %v1338_v30 = vpop.f32.mrf.mxu2 }
 0x29c   : > { %v1182_v33 = vpop.f32.mrf.mxu0  ;;  %v1355_v43 = vrot.slane %v1338_v30, 1  ;;  %v1261_v44 = vpop.f32.mrf.mxu1  ;;  %v4935_v30 = vld [vmem:[#allocation5 + $0x160] sm:$0xff] }
 0x29d   : > { %v1346_v36 = vrot.slane %v1182_v33, 7  ;;  %v4934_v33 = vld [vmem:[#allocation5 + $0x158] sm:$0xff]  ;;  %1823 = vmatpush.bf16.msra.mxu3 %v4926_v32  ;;  %v4967_v32 = vld [vmem:[#allocation2 + $0x220] sm:$0xff] }
 0x29e   : > { %1901 = vmatpush.bf16.msrb.mxu0 %v4935_v30  ;;  %v4951_v30 = vld [vmem:[#allocation2 + $0x1a0] sm:$0xff] }
 0x29f   : > { %v1347_v41 = vsel %vm1062_vm8, %v1345_v35, %v1346_v36  ;;  %v4917_v35 = vld [vmem:[#allocation5 + $0xd0] sm:$0xff] }
 0x2a0   : > { %v1352_v48 = vadd.f32 %v1347_v41, %v1261_v44  ;;  %v4925_v36 = vld [vmem:[#allocation5 + $0x110] sm:$0xff]  ;;  %1745 = vmatpush.bf16.msra.mxu2 %v4917_v35  ;;  %v4916_v41 = vld [vmem:[#allocation5 + $0xc8] sm:$0xff]  ;;  %v4958_v35 = vld [vmem:[#allocation2 + $0x1d8] sm:$0xff] }
 0x2a1   : > { %1824 = vmatpush.bf16.msra.mxu3 %v4925_v36  ;;  %v4966_v36 = vld [vmem:[#allocation2 + $0x218] sm:$0xff] }
 0x2a2   : > { %1902 = vmatpush.bf16.msrb.mxu0 %v4934_v33 }
 0x2a3   : > { %v1340_v42 = vpop.f32.mrf.mxu2 }
 0x2a4   : > { %v1356_v46 = vrot.slane %v1340_v42, 1  ;;  %v4924_v42 = vld [vmem:[#allocation5 + $0x108] sm:$0xff]  ;;  %1746 = vmatpush.bf16.msra.mxu2 %v4916_v41  ;;  %v4957_v41 = vld [vmem:[#allocation2 + $0x1d0] sm:$0xff] }
 0x2a5   : > { %1825 = vmatpush.bf16.msra.mxu3 %v4924_v42  ;;  %v4965_v42 = vld [vmem:[#allocation2 + $0x210] sm:$0xff] }
 0x2a6   : > { %v1357_v50 = vsel %vm1073_vm9, %v1355_v43, %v1356_v46  ;;  %v1360_v51 = vsel %vm1073_vm9, %v1356_v46, 0.0  ;;  %1903 = vmatpush.bf16.msrb.mxu0 %v4933_v37  ;;  %v4932_v43 = vld [vmem:[#allocation5 + $0x148] sm:$0xff] }
 0x2a7   : > { %v1361_v53 = vadd.f32 %v1357_v50, %v1351_v47  ;;  %v1362_v54 = vadd.f32 %v1360_v51, %v1352_v48  ;;  %v5208_v50 = vld [vmem:[%s6035_s4 + $0x1] ss:$0 sm:$0xff] }
 0x2a8   : > { %v4915_v51 = vld [vmem:[#allocation5 + $0xc0] sm:$0xff] }
 0x2a9   : > { %v1367_v56 = vadd.f32 %v5207_v49, %v1361_v53  ;;  %v1368_v57 = vadd.f32 %v5207_v49, %v1362_v54  ;;  %v4923_v53 = vld [vmem:[#allocation5 + $0x100] sm:$0xff]  ;;  %1747 = vmatpush.bf16.msra.mxu2 %v4915_v51 }
 0x2aa   : > { %1904 = vmatpush.bf16.msrb.mxu0 %v4932_v43  ;;  %1826 = vmatpush.bf16.msra.mxu3 %v4923_v53  ;;  %v5210_v51 = vld [vmem:[%s6037_s6 + $0x1] ss:$0 sm:$0xff]  ;;  %v4948_v53 = vld [vmem:[#allocation2 + $0x188] sm:$0xff] }
 0x2ab   : > { %v1369_v59 = vadd.f32 %v1367_v56, %v5865_v45  ;;  %v1370_v60 = vadd.f32 %v1368_v57, %v5873_v52 }
 0x2ad   : > { %v1371_v61 = vmul.f32 %v1369_v59, %v1369_v59  ;;  %v1372_v62 = vmul.f32 %v1370_v60, %v1370_v60  ;;  %v1939_v18 = vpack.c.bf16 %v1370_v60, %v1369_v59  ;;  %2110 = vmatpush.bf16.msrb.mxu2 %v4954_v21 }
 0x2ae   : > { %1905 = vmatpush.bf16.msrb.mxu0 %v4931_v55 }
 0x2af   : > { %v1373_v0 = vmul.f32 %v1371_v61, %v1369_v59  ;;  %v1374_v1 = vmul.f32 %v1372_v62, %v1370_v60 }
 0x2b1   : > { %v1375_v2 = vmul.f32 0.044715, %v1373_v0  ;;  %v1376_v3 = vmul.f32 0.044715, %v1374_v1  ;;  %2111 = vmatpush.bf16.msrb.mxu2 %v4953_v24 }
 0x2b3   : > { %v1377_v5 = vadd.f32 %v1375_v2, %v1369_v59  ;;  %v1378_v6 = vadd.f32 %v1376_v3, %v1370_v60 }
 0x2b5   : > { %v1379_v7 = vmul.f32 0.7978846, %v1377_v5  ;;  %v1380_v8 = vmul.f32 0.7978846, %v1378_v6  ;;  %2112 = vmatpush.bf16.msrb.mxu2 %v4952_v27 }
 0x2b7   : > { %5226 = vtanh.f32 %v1379_v7 }
 0x2b8   : > { %5228 = vtanh.f32 %v1380_v8 }
 0x2b9   : > { %2113 = vmatpush.bf16.msrb.mxu2 %v4951_v30  ;;  %v4978_v30 = vld [vmem:[#allocation5 + $0x1b8] sm:$0xff] }
 0x2bd   : > { %v5227_v9 = vpop.eup %5226 }
 0x2be   : > { %v5229_v10 = vpop.eup %5228  ;;  %v1383_v11 = vadd.f32 1.0, %v5227_v9 }
 0x2bf   : > { %v1384_v12 = vadd.f32 1.0, %v5229_v10 }
 0x2c0   : > { %v1385_v13 = vmul.f32 0.5, %v1383_v11 }
 0x2c1   : > { %v1386_v14 = vmul.f32 0.5, %v1384_v12 }
 0x2c2   : > { %v1387_v15 = vmul.f32 %v1385_v13, %v1369_v59 }
 0x2c3   : > { %v1388_v16 = vmul.f32 %v1386_v14, %v1370_v60 }
 0x2c5   : > { %v1389_v17 = vpack.c.bf16 %v1388_v16, %v1387_v15 }
 0x2c7   : > { %1463 = vmatmul.bf16.vlgmr.msrb.gmra.mxu3 %v1389_v17  ;;  %1542 = vmatmul.bf16.vlgmr.msra.gmra.mxu0 %v1389_v17 }
 0x2c8   : > { %1621 = vmatmul.bf16.vlgmr.msra.gmra.mxu1 %v1389_v17  ;;  %2189 = vmatpush.bf16.msrb.mxu3 %v4962_v22 }
 0x2c9   : > { %2268 = vmatpush.bf16.msra.mxu0 %v4970_v23  ;;  %2393 = vmatpush.bf16.msra.mxu1 %v4978_v30 }
 0x2cc   : > { %2190 = vmatpush.bf16.msrb.mxu3 %v4961_v25 }
 0x2cd   : > { %2269 = vmatpush.bf16.msra.mxu0 %v4969_v26 }
 0x2d0   : > { %2191 = vmatpush.bf16.msrb.mxu3 %v4960_v28 }
 0x2d1   : > { %2270 = vmatpush.bf16.msra.mxu0 %v4968_v29 }
 0x2d4   : > { %2192 = vmatpush.bf16.msrb.mxu3 %v4959_v31  ;;  %v4986_v31 = vld [vmem:[#allocation5 + $0x1f8] sm:$0xff] }
 0x2d5   : > { %2271 = vmatpush.bf16.msra.mxu0 %v4967_v32  ;;  %v4994_v32 = vld [vmem:[#allocation5 + $0x238] sm:$0xff] }
 0x2d8   : > { %2016 = vmatmul.bf16.vlgmr.msrb.gmra.mxu1 %v1939_v18  ;;  %2193 = vmatpush.bf16.msrb.mxu3 %v4958_v35  ;;  %v4993_v35 = vld [vmem:[#allocation5 + $0x230] sm:$0xff] }
 0x2d9   : > { %2272 = vmatpush.bf16.msra.mxu0 %v4966_v36  ;;  %v4976_v36 = vld [vmem:[#allocation5 + $0x1a8] sm:$0xff] }
 0x2dc   : > { %2194 = vmatpush.bf16.msrb.mxu3 %v4957_v41  ;;  %v4991_v41 = vld [vmem:[#allocation5 + $0x220] sm:$0xff] }
 0x2dd   : > { %2273 = vmatpush.bf16.msra.mxu0 %v4965_v42 }
 0x344   : > { %v1543_v39 = vpop.f32.mrf.mxu0 }
 0x345   : > { %v1622_v34 = vpop.f32.mrf.mxu1 }
 0x346   : > { %v1641_v47 = vrot.slane %v1622_v34, 2  ;;  %v4950_v34 = vld [vmem:[#allocation2 + $0x198] sm:$0xff] }
 0x347   : > { %2114 = vmatpush.bf16.msrb.mxu2 %v4950_v34  ;;  %v4985_v34 = vld [vmem:[#allocation5 + $0x1f0] sm:$0xff] }
 0x34a   : > { %v1464_v38 = vpop.f32.mrf.mxu3 }
 0x34b   : > { %v1630_v40 = vrot.slane %v1464_v38, 6 }
 0x34c   : > { %v1545_v60 = vpop.f32.mrf.mxu0 }
 0x34d   : > { %v1635_v44 = vsel %vm1629_vm10, 0.0, %v1630_v40  ;;  %v1624_v46 = vpop.f32.mrf.mxu1 }
 0x34e   : > { %v1636_v48 = vadd.f32 %v1635_v44, %v1543_v39  ;;  %v1642_v49 = vrot.slane %v1624_v46, 2 }
 0x350   : > { %v1643_v54 = vsel %vm1640_vm11, %v1641_v47, %v1642_v49  ;;  %v1646_v0 = vsel %vm1640_vm11, %v1642_v49, 0.0  ;;  %v5209_v47 = vld [vmem:[%s6039_s8] ss:$0 sm:$0xff] }
 0x351   : > { %v1647_v56 = vadd.f32 %v1643_v54, %v1636_v48  ;;  %v4956_v54 = vld [vmem:[#allocation2 + $0x1c8] sm:$0xff] }
 0x352   : > { %v1466_v57 = vpop.f32.mrf.mxu3  ;;  %2195 = vmatpush.bf16.msrb.mxu3 %v4956_v54  ;;  %v4972_v54 = vld [vmem:[#allocation5 + $0x188] sm:$0xff] }
 0x353   : > { %v1654_v58 = vadd.f32 %v5208_v50, %v1647_v56  ;;  %v1631_v59 = vrot.slane %v1466_v57, 6  ;;  %v4964_v56 = vld [vmem:[#allocation2 + $0x208] sm:$0xff] }
 0x354   : > { %2274 = vmatpush.bf16.msra.mxu0 %v4964_v56  ;;  %v4988_v56 = vld [vmem:[#allocation5 + $0x208] sm:$0xff] }
 0x355   : > { %v1656_v61 = vmul.f32 %v1654_v58, %v1654_v58  ;;  %v1632_v62 = vsel %vm1629_vm10, %v1630_v40, %v1631_v59  ;;  %v4949_v40 = vld [vmem:[#allocation2 + $0x190] sm:$0xff]  ;;  %v2017_v43 = vpop.f32.mrf.mxu1 }
 0x356   : > { %v1637_v63 = vadd.f32 %v1632_v62, %v1545_v60  ;;  %2115 = vmatpush.bf16.msrb.mxu2 %v4949_v40  ;;  %v2018_v59 = vadd.f32 %v5209_v47, %v2017_v43  ;;  %v4947_v62 = vld [vmem:[#allocation2 + $0x180] sm:$0xff]  ;;  %v4974_v43 = vld [vmem:[#allocation5 + $0x198] sm:$0xff] }
 0x357   : > { %v1658_v1 = vmul.f32 %v1656_v61, %v1654_v58  ;;  %v4983_v40 = vld [vmem:[#allocation5 + $0x1e0] sm:$0xff] }
 0x358   : > { %v1648_v2 = vadd.f32 %v1646_v0, %v1637_v63  ;;  %v4955_v63 = vld [vmem:[#allocation2 + $0x1c0] sm:$0xff] }
 0x359   : > { %v1660_v3 = vmul.f32 0.044715, %v1658_v1  ;;  %v4963_v0 = vld [vmem:[#allocation2 + $0x200] sm:$0xff]  ;;  %2196 = vmatpush.bf16.msrb.mxu3 %v4955_v63 }
 0x35a   : > { %v1655_v4 = vadd.f32 %v5208_v50, %v1648_v2  ;;  %2116 = vmatpush.bf16.msrb.mxu2 %v4948_v53  ;;  %2275 = vmatpush.bf16.msra.mxu0 %v4963_v0  ;;  %v4971_v63 = vld [vmem:[#allocation5 + $0x180] sm:$0xff] }
 0x35b   : > { %v1662_v5 = vadd.f32 %v1660_v3, %v1654_v58  ;;  %v4979_v0 = vld [vmem:[#allocation5 + $0x1c0] sm:$0xff] }
 0x35c   : > { %v1657_v6 = vmul.f32 %v1655_v4, %v1655_v4 }
 0x35d   : > { %v1664_v7 = vmul.f32 0.7978846, %v1662_v5  ;;  %v2019_v5 = vpop.f32.mrf.mxu1 }
 0x35e   : > { %v1659_v8 = vmul.f32 %v1657_v6, %v1655_v4  ;;  %2117 = vmatpush.bf16.msrb.mxu2 %v4947_v62  ;;  %v5211_v62 = vld [vmem:[%s6035_s4 + $0x2] ss:$0 sm:$0xff] }
 0x35f   : > { %5230 = vtanh.f32 %v1664_v7 }
 0x360   : > { %v1661_v9 = vmul.f32 0.044715, %v1659_v8 }
 0x362   : > { %v1663_v10 = vadd.f32 %v1661_v9, %v1655_v4 }
 0x364   : > { %v1665_v11 = vmul.f32 0.7978846, %v1663_v10  ;;  %v2020_v10 = vadd.f32 %v5209_v47, %v2019_v5  ;;  %v4973_v47 = vld [vmem:[#allocation5 + $0x190] sm:$0xff] }
 0x365   : > { %v5231_v12 = vpop.eup %5230 }
 0x366   : > { %5232 = vtanh.f32 %v1665_v11  ;;  %v1668_v13 = vadd.f32 1.0, %v5231_v12 }
 0x368   : > { %v1670_v16 = vmul.f32 0.5, %v1668_v13 }
 0x36a   : > { %v1672_v18 = vmul.f32 %v1670_v16, %v1654_v58 }
 0x36c   : > { %v5233_v14 = vpop.eup %5232 }
 0x36d   : > { %v1669_v15 = vadd.f32 1.0, %v5233_v14 }
 0x36f   : > { %v1671_v17 = vmul.f32 0.5, %v1669_v15 }
 0x371   : > { %v1673_v19 = vmul.f32 %v1671_v17, %v1655_v4 }
 0x373   : > { %v1674_v20 = vpack.c.bf16 %v1673_v19, %v1672_v18 }
 0x375   : > { %1748 = vmatmul.bf16.vlgmr.msra.gmra.mxu2 %v1674_v20  ;;  %1827 = vmatmul.bf16.vlgmr.msra.gmra.mxu3 %v1674_v20 }
 0x376   : > { %1906 = vmatmul.bf16.vlgmr.msrb.gmra.mxu0 %v1674_v20  ;;  %2472 = vmatpush.bf16.msra.mxu2 %v4986_v31 }
 0x377   : > { %2551 = vmatpush.bf16.msra.mxu3 %v4994_v32  ;;  %v5018_v32 = vld [vmem:[#allocation2 + $0x2f8] sm:$0xff] }
 0x37a   : > { %2473 = vmatpush.bf16.msra.mxu2 %v4985_v34  ;;  %v5016_v34 = vld [vmem:[#allocation2 + $0x2e8] sm:$0xff] }
 0x37b   : > { %2552 = vmatpush.bf16.msra.mxu3 %v4993_v35  ;;  %v5015_v35 = vld [vmem:[#allocation2 + $0x2e0] sm:$0xff] }
 0x3f3   : > { %v1907_v33 = vpop.f32.mrf.mxu0 }
 0x3f4   : > { %v1924_v48 = vrot.slane %v1907_v33, 2  ;;  %v4977_v33 = vld [vmem:[#allocation5 + $0x1b0] sm:$0xff] }
 0x3f5   : > { %2394 = vmatpush.bf16.msra.mxu1 %v4977_v33  ;;  %v5017_v33 = vld [vmem:[#allocation2 + $0x2f0] sm:$0xff] }
 0x3f8   : > { %v1749_v37 = vpop.f32.mrf.mxu2  ;;  %v1828_v39 = vpop.f32.mrf.mxu3 }
 0x3f9   : > { %v1914_v38 = vrot.slane %v1749_v37, 6  ;;  %v4984_v37 = vld [vmem:[#allocation5 + $0x1e8] sm:$0xff]  ;;  %2395 = vmatpush.bf16.msra.mxu1 %v4976_v36  ;;  %v5002_v36 = vld [vmem:[#allocation2 + $0x278] sm:$0xff] }
 0x3fa   : > { %2474 = vmatpush.bf16.msra.mxu2 %v4984_v37  ;;  %v5010_v37 = vld [vmem:[#allocation2 + $0x2b8] sm:$0xff]  ;;  %2678 = vmatpush.bf16.msrb.mxu0 %v5002_v36 }
 0x3fb   : > { %v1919_v44 = vsel %vm1629_vm10, 0.0, %v1914_v38  ;;  %v1909_v46 = vpop.f32.mrf.mxu0 }
 0x3fc   : > { %v1920_v49 = vadd.f32 %v1919_v44, %v1828_v39  ;;  %v1925_v50 = vrot.slane %v1909_v46, 2  ;;  %v4975_v39 = vld [vmem:[#allocation5 + $0x1a0] sm:$0xff]  ;;  %v4982_v44 = vld [vmem:[#allocation5 + $0x1d8] sm:$0xff] }
 0x3fd   : > { %2396 = vmatpush.bf16.msra.mxu1 %v4975_v39  ;;  %v4990_v46 = vld [vmem:[#allocation5 + $0x218] sm:$0xff]  ;;  %v5001_v39 = vld [vmem:[#allocation2 + $0x270] sm:$0xff] }
 0x3fe   : > { %v1926_v55 = vsel %vm1640_vm11, %v1924_v48, %v1925_v50  ;;  %v1929_v6 = vsel %vm1640_vm11, %v1925_v50, 0.0  ;;  %2475 = vmatpush.bf16.msra.mxu2 %v4983_v40  ;;  %v4981_v48 = vld [vmem:[#allocation5 + $0x1d0] sm:$0xff]  ;;  %2679 = vmatpush.bf16.msrb.mxu0 %v5001_v39 }
 0x3ff   : > { %v1930_v57 = vadd.f32 %v1926_v55, %v1920_v49  ;;  %v4989_v49 = vld [vmem:[#allocation5 + $0x210] sm:$0xff]  ;;  %v4980_v55 = vld [vmem:[#allocation5 + $0x1c8] sm:$0xff] }
 0x400   : > { %v1751_v58 = vpop.f32.mrf.mxu2  ;;  %v1830_v1 = vpop.f32.mrf.mxu3  ;;  %v5009_v40 = vld [vmem:[#allocation2 + $0x2b0] sm:$0xff] }
 0x401   : > { %v1915_v60 = vrot.slane %v1751_v58, 6  ;;  %v1937_v61 = vadd.f32 %v5210_v51, %v1930_v57  ;;  %2397 = vmatpush.bf16.msra.mxu1 %v4974_v43  ;;  %v5008_v43 = vld [vmem:[#allocation2 + $0x2a8] sm:$0xff] }
 0x402   : > { %2476 = vmatpush.bf16.msra.mxu2 %v4982_v44  ;;  %v5012_v44 = vld [vmem:[#allocation2 + $0x2c8] sm:$0xff] }
 0x403   : > { %v1916_v2 = vsel %vm1629_vm10, %v1914_v38, %v1915_v60  ;;  %v2022_v3 = vadd.f32 %v2018_v59, %v1937_v61  ;;  %v4992_v38 = vld [vmem:[#allocation5 + $0x228] sm:$0xff] }
 0x404   : > { %v1921_v4 = vadd.f32 %v1916_v2, %v1830_v1  ;;  %2553 = vmatpush.bf16.msra.mxu3 %v4992_v38  ;;  %v4987_v2 = vld [vmem:[#allocation5 + $0x200] sm:$0xff]  ;;  %v5014_v38 = vld [vmem:[#allocation2 + $0x2d8] sm:$0xff] }
 0x405   : > { %v5915_v7 = vadd.f32 %v2022_v3, %v5865_v45  ;;  %2398 = vmatpush.bf16.msra.mxu1 %v4973_v47  ;;  %v5007_v47 = vld [vmem:[#allocation2 + $0x2a0] sm:$0xff] }
 0x406   : > { %v1931_v8 = vadd.f32 %v1929_v6, %v1921_v4  ;;  %2477 = vmatpush.bf16.msra.mxu2 %v4981_v48  ;;  %v5011_v48 = vld [vmem:[#allocation2 + $0x2c0] sm:$0xff] }
 0x407   : > { %v2026_v9 = vmul.f32 %v5915_v7, %v5915_v7 }
 0x408   : > { %v1938_v11 = vadd.f32 %v5210_v51, %v1931_v8  ;;  %2554 = vmatpush.bf16.msra.mxu3 %v4991_v41  ;;  %v5013_v41 = vld [vmem:[#allocation2 + $0x2d0] sm:$0xff] }
 0x409   : > { %v2028_v12 = vmul.f32 %v2026_v9, %v5915_v7  ;;  %2399 = vmatpush.bf16.msra.mxu1 %v4972_v54  ;;  %v4997_v54 = vld [vmem:[#allocation2 + $0x250] sm:$0xff] }
 0x40a   : > { %v2023_v13 = vadd.f32 %v2020_v10, %v1938_v11  ;;  %2478 = vmatpush.bf16.msra.mxu2 %v4980_v55  ;;  %v5005_v55 = vld [vmem:[#allocation2 + $0x290] sm:$0xff] }
 0x40b   : > { %v2030_v14 = vmul.f32 0.044715, %v2028_v12 }
 0x40c   : > { %v5921_v15 = vadd.f32 %v2023_v13, %v5873_v52  ;;  %2555 = vmatpush.bf16.msra.mxu3 %v4990_v46  ;;  %v4999_v46 = vld [vmem:[#allocation2 + $0x260] sm:$0xff] }
 0x40d   : > { %v2032_v16 = vadd.f32 %v2030_v14, %v5915_v7  ;;  %2400 = vmatpush.bf16.msra.mxu1 %v4971_v63 }
 0x40e   : > { %v2027_v45 = vmul.f32 %v5921_v15, %v5921_v15  ;;  %2479 = vmatpush.bf16.msra.mxu2 %v4979_v0  ;;  %v4995_v0 = vld [vmem:[#allocation2 + $0x240] sm:$0xff] }
 0x40f   : > { %v2034_v17 = vmul.f32 0.7978846, %v2032_v16 }
 0x410   : > { %v2029_v18 = vmul.f32 %v2027_v45, %v5921_v15  ;;  %2556 = vmatpush.bf16.msra.mxu3 %v4989_v49  ;;  %v4998_v49 = vld [vmem:[#allocation2 + $0x258] sm:$0xff] }
 0x411   : > { %5234 = vtanh.f32 %v2034_v17  ;;  %2757 = vmatpush.bf16.msrb.mxu1 %v5010_v37 }
 0x412   : > { %v2031_v19 = vmul.f32 0.044715, %v2029_v18 }
 0x414   : > { %v2033_v20 = vadd.f32 %v2031_v19, %v5921_v15  ;;  %2557 = vmatpush.bf16.msra.mxu3 %v4988_v56  ;;  %v5049_v56 = vld [vmem:[#allocation7 + $0x70] sm:$0xff] }
 0x415   : > { %2758 = vmatpush.bf16.msrb.mxu1 %v5009_v40 }
 0x416   : > { %v2035_v21 = vmul.f32 0.7978846, %v2033_v20 }
 0x417   : > { %v5235_v22 = vpop.eup %5234 }
 0x418   : > { %5236 = vtanh.f32 %v2035_v21  ;;  %v2038_v23 = vadd.f32 1.0, %v5235_v22  ;;  %2558 = vmatpush.bf16.msra.mxu3 %v4987_v2 }
 0x419   : > { %2759 = vmatpush.bf16.msrb.mxu1 %v5008_v43 }
 0x41a   : > { %v2040_v52 = vmul.f32 0.5, %v2038_v23 }
 0x41c   : > { %v2042_v27 = vmul.f32 %v2040_v52, %v5915_v7 }
 0x41d   : > { %2760 = vmatpush.bf16.msrb.mxu1 %v5007_v47  ;;  %v5034_v47 = vld [vmem:[#allocation5 + $0x2b8] sm:$0xff] }
 0x41e   : > { %v5237_v24 = vpop.eup %5236 }
 0x41f   : > { %v2039_v25 = vadd.f32 1.0, %v5237_v24 }
 0x421   : > { %v2041_v26 = vmul.f32 0.5, %v2039_v25 }
 0x423   : > { %v2043_v28 = vmul.f32 %v2041_v26, %v5921_v15 }
 0x425   : > { %v2044_v29 = vpack.c.bf16 %v2043_v28, %v2042_v27 }
 0x427   : > { %2118 = vmatmul.bf16.vlgmr.msrb.gmra.mxu2 %v2044_v29  ;;  %2197 = vmatmul.bf16.vlgmr.msrb.gmra.mxu3 %v2044_v29 }
 0x428   : > { %2276 = vmatmul.bf16.vlgmr.msra.gmra.mxu0 %v2044_v29  ;;  %2836 = vmatpush.bf16.msrb.mxu2 %v5018_v32 }
 0x42c   : > { %2837 = vmatpush.bf16.msrb.mxu2 %v5017_v33 }
 0x430   : > { %2838 = vmatpush.bf16.msrb.mxu2 %v5016_v34 }
 0x434   : > { %2839 = vmatpush.bf16.msrb.mxu2 %v5015_v35 }
 0x438   : > { %2840 = vmatpush.bf16.msrb.mxu2 %v5014_v38 }
 0x43c   : > { %2841 = vmatpush.bf16.msrb.mxu2 %v5013_v41 }
 0x440   : > { %2842 = vmatpush.bf16.msrb.mxu2 %v5012_v44 }
 0x444   : > { %2843 = vmatpush.bf16.msrb.mxu2 %v5011_v48  ;;  %v5042_v48 = vld [vmem:[#allocation5 + $0x2f8] sm:$0xff] }
 0x4a5   : > { %v2277_v42 = vpop.f32.mrf.mxu0 }
 0x4a6   : > { %v2294_v59 = vrot.slane %v2277_v42, 1  ;;  %v5000_v42 = vld [vmem:[#allocation2 + $0x268] sm:$0xff] }
 0x4a7   : > { %2680 = vmatpush.bf16.msrb.mxu0 %v5000_v42 }
 0x4aa   : > { %v2119_v50 = vpop.f32.mrf.mxu2  ;;  %v2198_v53 = vpop.f32.mrf.mxu3 }
 0x4ab   : > { %v2284_v51 = vrot.slane %v2119_v50, 7  ;;  %2681 = vmatpush.bf16.msrb.mxu0 %v4999_v46  ;;  %v5006_v50 = vld [vmem:[#allocation2 + $0x298] sm:$0xff] }
 0x4ac   : > { %2761 = vmatpush.bf16.msrb.mxu1 %v5006_v50  ;;  %v5026_v46 = vld [vmem:[#allocation5 + $0x278] sm:$0xff]  ;;  %v5033_v50 = vld [vmem:[#allocation5 + $0x2b0] sm:$0xff] }
 0x4ad   : > { %v2289_v57 = vsel %vm1062_vm8, 0.0, %v2284_v51  ;;  %v2279_v58 = vpop.f32.mrf.mxu0  ;;  %2961 = vmatpush.bf16.msrb.mxu3 %v5026_v46 }
 0x4ae   : > { %v2290_v60 = vadd.f32 %v2289_v57, %v2198_v53  ;;  %v2295_v61 = vrot.slane %v2279_v58, 1  ;;  %v5050_v53 = vld [vmem:[#allocation7 + $0x78] sm:$0xff] }
 0x4af   : > { %2682 = vmatpush.bf16.msrb.mxu0 %v4998_v49  ;;  %v5025_v49 = vld [vmem:[#allocation5 + $0x270] sm:$0xff] }
 0x4b0   : > { %v2296_v1 = vsel %vm1073_vm9, %v2294_v59, %v2295_v61  ;;  %v2299_v12 = vsel %vm1073_vm9, %v2295_v61, 0.0  ;;  %2762 = vmatpush.bf16.msrb.mxu1 %v5005_v55  ;;  %v4996_v59 = vld [vmem:[#allocation2 + $0x248] sm:$0xff] }
 0x4b1   : > { %v2300_v3 = vadd.f32 %v2296_v1, %v2290_v60  ;;  %v5004_v60 = vld [vmem:[#allocation2 + $0x288] sm:$0xff]  ;;  %v5003_v1 = vld [vmem:[#allocation2 + $0x280] sm:$0xff]  ;;  %2962 = vmatpush.bf16.msrb.mxu3 %v5025_v49  ;;  %v5057_v49 = vld [vmem:[#allocation8 + $0x30] sm:$0xff] }
 0x4b2   : > { %v2121_v4 = vpop.f32.mrf.mxu2  ;;  %v2200_v8 = vpop.f32.mrf.mxu3  ;;  %v5040_v55 = vld [vmem:[#allocation5 + $0x2e8] sm:$0xff] }
 0x4b3   : > { %v2285_v5 = vrot.slane %v2121_v4, 7  ;;  %v2307_v6 = vadd.f32 %v5211_v62, %v2300_v3  ;;  %2683 = vmatpush.bf16.msrb.mxu0 %v4997_v54  ;;  %v5047_v3 = vld [vmem:[#allocation7 + $0x60] sm:$0xff]  ;;  %v5032_v54 = vld [vmem:[#allocation5 + $0x2a8] sm:$0xff] }
 0x4b4   : > { %2763 = vmatpush.bf16.msrb.mxu1 %v5004_v60  ;;  %v5030_v60 = vld [vmem:[#allocation5 + $0x298] sm:$0xff] }
 0x4b5   : > { %v2286_v9 = vsel %vm1062_vm8, %v2284_v51, %v2285_v5  ;;  %v2309_v10 = vmul.f32 %v2307_v6, %v2307_v6 }
 0x4b6   : > { %v2291_v11 = vadd.f32 %v2286_v9, %v2200_v8 }
 0x4b7   : > { %v2311_v13 = vmul.f32 %v2309_v10, %v2307_v6  ;;  %2684 = vmatpush.bf16.msrb.mxu0 %v4996_v59  ;;  %v5022_v59 = vld [vmem:[#allocation5 + $0x258] sm:$0xff] }
 0x4b8   : > { %v2301_v14 = vadd.f32 %v2299_v12, %v2291_v11  ;;  %2764 = vmatpush.bf16.msrb.mxu1 %v5003_v1  ;;  %v5037_v1 = vld [vmem:[#allocation5 + $0x2d0] sm:$0xff] }
 0x4b9   : > { %v2313_v16 = vmul.f32 0.044715, %v2311_v13  ;;  %v5212_v13 = vld [vmem:[%s6037_s6 + $0x2] ss:$0 sm:$0xff] }
 0x4ba   : > { %v2308_v45 = vadd.f32 %v5211_v62, %v2301_v14  ;;  %v5048_v62 = vld [vmem:[#allocation7 + $0x68] sm:$0xff] }
 0x4bb   : > { %v2315_v17 = vadd.f32 %v2313_v16, %v2307_v6  ;;  %2685 = vmatpush.bf16.msrb.mxu0 %v4995_v0  ;;  %v5029_v0 = vld [vmem:[#allocation5 + $0x290] sm:$0xff] }
 0x4bc   : > { %v2310_v18 = vmul.f32 %v2308_v45, %v2308_v45 }
 0x4bd   : > { %v2317_v19 = vmul.f32 0.7978846, %v2315_v17 }
 0x4be   : > { %v2312_v20 = vmul.f32 %v2310_v18, %v2308_v45  ;;  %v5046_v18 = vld [vmem:[#allocation7 + $0x58] sm:$0xff] }
 0x4bf   : > { %5238 = vtanh.f32 %v2317_v19  ;;  %3040 = vmatpush.bf16.msra.mxu0 %v5034_v47 }
 0x4c0   : > { %v2314_v21 = vmul.f32 0.044715, %v2312_v20 }
 0x4c2   : > { %v2316_v22 = vadd.f32 %v2314_v21, %v2308_v45  ;;  %v5045_v21 = vld [vmem:[#allocation7 + $0x50] sm:$0xff] }
 0x4c3   : > { %3041 = vmatpush.bf16.msra.mxu0 %v5033_v50  ;;  %v5056_v50 = vld [vmem:[#allocation8 + $0x28] sm:$0xff] }
 0x4c4   : > { %v2318_v23 = vmul.f32 0.7978846, %v2316_v22 }
 0x4c5   : > { %v5239_v24 = vpop.eup %5238 }
 0x4c6   : > { %5240 = vtanh.f32 %v2318_v23  ;;  %v2321_v25 = vadd.f32 1.0, %v5239_v24 }
 0x4c7   : > { %3042 = vmatpush.bf16.msra.mxu0 %v5032_v54  ;;  %v5054_v54 = vld [vmem:[#allocation8 + $0x18] sm:$0xff] }
 0x4c8   : > { %v2323_v27 = vmul.f32 0.5, %v2321_v25 }
 0x4ca   : > { %v2325_v29 = vmul.f32 %v2323_v27, %v2307_v6 }
 0x4cc   : > { %v5241_v52 = vpop.eup %5240 }
 0x4cd   : > { %v2322_v26 = vadd.f32 1.0, %v5241_v52  ;;  %v5044_v52 = vld [vmem:[#allocation7 + $0x48] sm:$0xff] }
 0x4cf   : > { %v2324_v28 = vmul.f32 0.5, %v2322_v26 }
 0x4d1   : > { %v2326_v30 = vmul.f32 %v2324_v28, %v2308_v45 }
 0x4d3   : > { %v2327_v31 = vpack.c.bf16 %v2326_v30, %v2325_v29  ;;  %v5043_v30 = vld [vmem:[#allocation7 + $0x40] sm:$0xff] }
 0x4d5   : > { %2401 = vmatmul.bf16.vlgmr.msra.gmra.mxu1 %v2327_v31  ;;  %2480 = vmatmul.bf16.vlgmr.msra.gmra.mxu2 %v2327_v31 }
 0x4d6   : > { %2559 = vmatmul.bf16.vlgmr.msra.gmra.mxu3 %v2327_v31  ;;  %3231 = vmatpush.bf16.msra.mxu2 %v5050_v53  ;;  %v5024_v53 = vld [vmem:[#allocation5 + $0x268] sm:$0xff] }
 0x4d7   : > { %3119 = vmatpush.bf16.msra.mxu1 %v5042_v48  ;;  %2963 = vmatpush.bf16.msrb.mxu3 %v5024_v53  ;;  %v5074_v53 = vld [vmem:[#allocation11 + $0x38] sm:$0xff] }
 0x4da   : > { %3232 = vmatpush.bf16.msra.mxu2 %v5049_v56  ;;  %v5023_v56 = vld [vmem:[#allocation5 + $0x260] sm:$0xff] }
 0x4db   : > { %2964 = vmatpush.bf16.msrb.mxu3 %v5023_v56  ;;  %v5053_v56 = vld [vmem:[#allocation8 + $0x10] sm:$0xff] }
 0x4de   : > { %3233 = vmatpush.bf16.msra.mxu2 %v5048_v62 }
 0x4df   : > { %2965 = vmatpush.bf16.msrb.mxu3 %v5022_v59  ;;  %v5071_v59 = vld [vmem:[#allocation11 + $0x20] sm:$0xff] }
 0x4e2   : > { %3234 = vmatpush.bf16.msra.mxu2 %v5047_v3  ;;  %v5028_v3 = vld [vmem:[#allocation5 + $0x288] sm:$0xff] }
 0x4e6   : > { %3235 = vmatpush.bf16.msra.mxu2 %v5046_v18 }
 0x4ea   : > { %3236 = vmatpush.bf16.msra.mxu2 %v5045_v21 }
 0x4ee   : > { %3237 = vmatpush.bf16.msra.mxu2 %v5044_v52 }
 0x4f2   : > { %3238 = vmatpush.bf16.msra.mxu2 %v5043_v30 }
 0x552   : > { %v2402_v51 = vpop.f32.mrf.mxu1 }
 0x553   : > { %v2567_v2 = vrot.slane %v2402_v51, 7  ;;  %v5041_v51 = vld [vmem:[#allocation5 + $0x2f0] sm:$0xff] }
 0x554   : > { %3120 = vmatpush.bf16.msra.mxu1 %v5041_v51  ;;  %v5055_v51 = vld [vmem:[#allocation8 + $0x20] sm:$0xff] }
 0x555   : > { %v2572_v9 = vsel %vm1062_vm8, 0.0, %v2567_v2 }
 0x558   : > { %v2481_v57 = vpop.f32.mrf.mxu2  ;;  %3121 = vmatpush.bf16.msra.mxu1 %v5040_v55  ;;  %v5073_v55 = vld [vmem:[#allocation11 + $0x30] sm:$0xff] }
 0x559   : > { %v2560_v58 = vpop.f32.mrf.mxu3  ;;  %v2573_v12 = vadd.f32 %v2572_v9, %v2481_v57  ;;  %v5031_v57 = vld [vmem:[#allocation5 + $0x2a0] sm:$0xff] }
 0x55a   : > { %v2404_v61 = vpop.f32.mrf.mxu1  ;;  %v2577_v10 = vrot.slane %v2560_v58, 1  ;;  %v5039_v58 = vld [vmem:[#allocation5 + $0x2e0] sm:$0xff]  ;;  %3043 = vmatpush.bf16.msra.mxu0 %v5031_v57  ;;  %v5072_v57 = vld [vmem:[#allocation11 + $0x28] sm:$0xff] }
 0x55b   : > { %v2568_v63 = vrot.slane %v2404_v61, 7  ;;  %v5038_v61 = vld [vmem:[#allocation5 + $0x2d8] sm:$0xff]  ;;  %v5019_v9 = vld [vmem:[#allocation5 + $0x240] sm:$0xff] }
 0x55c   : > { %3122 = vmatpush.bf16.msra.mxu1 %v5039_v58  ;;  %v5052_v58 = vld [vmem:[#allocation8 + $0x8] sm:$0xff] }
 0x55d   : > { %v2569_v5 = vsel %vm1062_vm8, %v2567_v2, %v2568_v63  ;;  %v5021_v63 = vld [vmem:[#allocation5 + $0x250] sm:$0xff]  ;;  %v5020_v2 = vld [vmem:[#allocation5 + $0x248] sm:$0xff] }
 0x55e   : > { %3044 = vmatpush.bf16.msra.mxu0 %v5030_v60  ;;  %2966 = vmatpush.bf16.msrb.mxu3 %v5021_v63  ;;  %v5051_v60 = vld [vmem:[#allocation8] sm:$0xff] }
 0x560   : > { %v2483_v4 = vpop.f32.mrf.mxu2  ;;  %3123 = vmatpush.bf16.msra.mxu1 %v5038_v61  ;;  %v5070_v61 = vld [vmem:[#allocation11 + $0x18] sm:$0xff] }
 0x561   : > { %v2574_v6 = vadd.f32 %v2569_v5, %v2483_v4  ;;  %v2562_v8 = vpop.f32.mrf.mxu3  ;;  %v5036_v5 = vld [vmem:[#allocation5 + $0x2c8] sm:$0xff] }
 0x562   : > { %v2578_v11 = vrot.slane %v2562_v8, 1  ;;  %3045 = vmatpush.bf16.msra.mxu0 %v5029_v0  ;;  %2967 = vmatpush.bf16.msrb.mxu3 %v5020_v2  ;;  %v5068_v0 = vld [vmem:[#allocation11 + $0x8] sm:$0xff]  ;;  %v5067_v2 = vld [vmem:[#allocation11] sm:$0xff] }
 0x564   : > { %v2579_v14 = vsel %vm1073_vm9, %v2577_v10, %v2578_v11  ;;  %v2582_v16 = vsel %vm1073_vm9, %v2578_v11, 0.0  ;;  %3124 = vmatpush.bf16.msra.mxu1 %v5037_v1  ;;  %v5027_v10 = vld [vmem:[#allocation5 + $0x280] sm:$0xff] }
 0x565   : > { %v2583_v45 = vadd.f32 %v2579_v14, %v2573_v12  ;;  %v2584_v17 = vadd.f32 %v2582_v16, %v2574_v6 }
 0x566   : > { %3046 = vmatpush.bf16.msra.mxu0 %v5028_v3  ;;  %2968 = vmatpush.bf16.msrb.mxu3 %v5019_v9 }
 0x567   : > { %v2590_v19 = vadd.f32 %v5212_v13, %v2583_v45  ;;  %v2591_v20 = vadd.f32 %v5212_v13, %v2584_v17  ;;  %v5035_v13 = vld [vmem:[#allocation5 + $0x2c0] sm:$0xff] }
 0x568   : > { %3125 = vmatpush.bf16.msra.mxu1 %v5036_v5 }
 0x569   : > { %v2592_v22 = vadd.f32 %v2590_v19, %v5915_v7  ;;  %v2593_v23 = vadd.f32 %v2591_v20, %v5921_v15 }
 0x56a   : > { %3047 = vmatpush.bf16.msra.mxu0 %v5027_v10 }
 0x56b   : > { %v2594_v24 = vmul.f32 %v2592_v22, %v2592_v22  ;;  %v2595_v25 = vmul.f32 %v2593_v23, %v2593_v23  ;;  %v3160_v44 = vpack.c.bf16 %v2593_v23, %v2592_v22 }
 0x56c   : > { %3126 = vmatpush.bf16.msra.mxu1 %v5035_v13  ;;  %v5066_v13 = vld [vmem:[#allocation10 + $0x38] sm:$0xff] }
 0x56d   : > { %v2596_v26 = vmul.f32 %v2594_v24, %v2592_v22  ;;  %v2597_v27 = vmul.f32 %v2595_v25, %v2593_v23  ;;  %v5058_v25 = vld [vmem:[#allocation8 + $0x38] sm:$0xff] }
 0x56e   : > { %3318 = vmatpush.bf16.msra.mxu3 %v5058_v25 }
 0x56f   : > { %v2598_v28 = vmul.f32 0.044715, %v2596_v26  ;;  %v2599_v29 = vmul.f32 0.044715, %v2597_v27 }
 0x571   : > { %v2600_v31 = vadd.f32 %v2598_v28, %v2592_v22  ;;  %v2601_v32 = vadd.f32 %v2599_v29, %v2593_v23 }
 0x572   : > { %3319 = vmatpush.bf16.msra.mxu3 %v5057_v49  ;;  %v5062_v49 = vld [vmem:[#allocation10 + $0x18] sm:$0xff] }
 0x573   : > { %v2602_v33 = vmul.f32 0.7978846, %v2600_v31  ;;  %v2603_v34 = vmul.f32 0.7978846, %v2601_v32 }
 0x575   : > { %5242 = vtanh.f32 %v2602_v33 }
 0x576   : > { %5244 = vtanh.f32 %v2603_v34  ;;  %3320 = vmatpush.bf16.msra.mxu3 %v5056_v50  ;;  %v5078_v50 = vld [vmem:[#allocation13 + $0x18] sm:$0xff] }
 0x57a   : > { %3321 = vmatpush.bf16.msra.mxu3 %v5055_v51  ;;  %v5077_v51 = vld [vmem:[#allocation13 + $0x10] sm:$0xff] }
 0x57b   : > { %v5243_v35 = vpop.eup %5242 }
 0x57c   : > { %v5245_v36 = vpop.eup %5244  ;;  %v2606_v37 = vadd.f32 1.0, %v5243_v35 }
 0x57d   : > { %v2607_v38 = vadd.f32 1.0, %v5245_v36 }
 0x57e   : > { %v2608_v39 = vmul.f32 0.5, %v2606_v37  ;;  %3322 = vmatpush.bf16.msra.mxu3 %v5054_v54  ;;  %v5059_v54 = vld [vmem:[#allocation10] sm:$0xff] }
 0x57f   : > { %v2609_v40 = vmul.f32 0.5, %v2607_v38 }
 0x580   : > { %v2610_v41 = vmul.f32 %v2608_v39, %v2592_v22  ;;  %v5213_v22 = vld [vmem:[%s6035_s4 + $0x3] ss:$0 sm:$0xff] }
 0x581   : > { %v2611_v42 = vmul.f32 %v2609_v40, %v2593_v23 }
 0x582   : > { %3323 = vmatpush.bf16.msra.mxu3 %v5053_v56 }
 0x583   : > { %v2612_v43 = vpack.c.bf16 %v2611_v42, %v2610_v41 }
 0x585   : > { %2686 = vmatmul.bf16.vlgmr.msrb.gmra.mxu0 %v2612_v43  ;;  %2765 = vmatmul.bf16.vlgmr.msrb.gmra.mxu1 %v2612_v43 }
 0x586   : > { %2844 = vmatmul.bf16.vlgmr.msrb.gmra.mxu2 %v2612_v43  ;;  %3492 = vmatpush.bf16.msrb.mxu1 %v5074_v53  ;;  %v5076_v53 = vld [vmem:[#allocation13 + $0x8] sm:$0xff] }
 0x587   : > { %3324 = vmatpush.bf16.msra.mxu3 %v5052_v58  ;;  %3403 = vmatpush.bf16.msrb.mxu0 %v5066_v13  ;;  %v3443_v58 = vld [vmem:[%s6045_s14] sm:$0x1] }
 0x58a   : > { %3493 = vmatpush.bf16.msrb.mxu1 %v5073_v55  ;;  %v5075_v55 = vld [vmem:[#allocation13] sm:$0xff] }
 0x58b   : > { %3325 = vmatpush.bf16.msra.mxu3 %v5051_v60 }
 0x58e   : > { %3494 = vmatpush.bf16.msrb.mxu1 %v5072_v57  ;;  %v5216_v57 = vld [vmem:[%s6041_s10] ss:$0 sm:$0xff] }
 0x592   : > { %3495 = vmatpush.bf16.msrb.mxu1 %v5071_v59 }
 0x596   : > { %3239 = vmatmul.bf16.vlgmr.msra.gmra.mxu2 %v3160_v44  ;;  %3496 = vmatpush.bf16.msrb.mxu1 %v5070_v61 }
 0x602   : > { %v2687_v62 = vpop.f32.mrf.mxu0  ;;  %v2766_v4 = vpop.f32.mrf.mxu1 }
 0x603   : > { %v2852_v11 = vrot.slane %v2687_v62, 6  ;;  %v5069_v62 = vld [vmem:[#allocation11 + $0x10] sm:$0xff] }
 0x604   : > { %3497 = vmatpush.bf16.msrb.mxu1 %v5069_v62 }
 0x605   : > { %v2857_v14 = vsel %vm1629_vm10, 0.0, %v2852_v11 }
 0x606   : > { %v2858_v20 = vadd.f32 %v2857_v14, %v2766_v4  ;;  %v5082_v14 = vld [vmem:[#allocation13 + $0x38] sm:$0xff] }
 0x607   : > { %3572 = vmatpush.bf16.msrb.mxu2 %v5082_v14 }
 0x608   : > { %3498 = vmatpush.bf16.msrb.mxu1 %v5068_v0 }
 0x609   : > { %v2845_v6 = vpop.f32.mrf.mxu2 }
 0x60a   : > { %v2689_v8 = vpop.f32.mrf.mxu0  ;;  %v2862_v17 = vrot.slane %v2845_v6, 2  ;;  %v2768_v18 = vpop.f32.mrf.mxu1 }
 0x60b   : > { %v2853_v12 = vrot.slane %v2689_v8, 6 }
 0x60c   : > { %3499 = vmatpush.bf16.msrb.mxu1 %v5067_v2 }
 0x60d   : > { %v2854_v16 = vsel %vm1629_vm10, %v2852_v11, %v2853_v12 }
 0x60e   : > { %v2859_v21 = vadd.f32 %v2854_v16, %v2768_v18  ;;  %v5065_v18 = vld [vmem:[#allocation10 + $0x30] sm:$0xff] }
 0x60f   : > { %3404 = vmatpush.bf16.msrb.mxu0 %v5065_v18 }
 0x611   : > { %v2847_v45 = vpop.f32.mrf.mxu2 }
 0x612   : > { %v2863_v19 = vrot.slane %v2847_v45, 2  ;;  %v5215_v45 = vld [vmem:[%s6037_s6 + $0x3] ss:$0 sm:$0xff] }
 0x614   : > { %v2864_v23 = vsel %vm1640_vm11, %v2862_v17, %v2863_v19  ;;  %v2867_v24 = vsel %vm1640_vm11, %v2863_v19, 0.0  ;;  %v5081_v19 = vld [vmem:[#allocation13 + $0x30] sm:$0xff] }
 0x615   : > { %v2868_v52 = vadd.f32 %v2864_v23, %v2858_v20  ;;  %v2869_v26 = vadd.f32 %v2867_v24, %v2859_v21  ;;  %v5214_v21 = vld [vmem:[%s6039_s8 + $0x1] ss:$0 sm:$0xff]  ;;  %3573 = vmatpush.bf16.msrb.mxu2 %v5081_v19 }
 0x617   : > { %v2875_v27 = vadd.f32 %v5213_v22, %v2868_v52  ;;  %v2876_v28 = vadd.f32 %v5213_v22, %v2869_v26  ;;  %v5064_v52 = vld [vmem:[#allocation10 + $0x28] sm:$0xff] }
 0x618   : > { %v5080_v26 = vld [vmem:[#allocation13 + $0x28] sm:$0xff]  ;;  %3405 = vmatpush.bf16.msrb.mxu0 %v5064_v52 }
 0x619   : > { %v2877_v29 = vmul.f32 %v2875_v27, %v2875_v27  ;;  %v2878_v30 = vmul.f32 %v2876_v28, %v2876_v28  ;;  %v3240_v5 = vpop.f32.mrf.mxu2  ;;  %3574 = vmatpush.bf16.msrb.mxu2 %v5080_v26 }
 0x61b   : > { %v2879_v31 = vmul.f32 %v2877_v29, %v2875_v27  ;;  %v2880_v32 = vmul.f32 %v2878_v30, %v2876_v28  ;;  %v3241_v29 = vadd.f32 %v5214_v21, %v3240_v5 }
 0x61d   : > { %v2881_v33 = vmul.f32 0.044715, %v2879_v31  ;;  %v2882_v34 = vmul.f32 0.044715, %v2880_v32 }
 0x61f   : > { %v2884_v35 = vadd.f32 %v2882_v34, %v2876_v28  ;;  %v2883_v36 = vadd.f32 %v2881_v33, %v2875_v27  ;;  %v5063_v34 = vld [vmem:[#allocation10 + $0x20] sm:$0xff] }
 0x620   : > { %3406 = vmatpush.bf16.msrb.mxu0 %v5063_v34 }
 0x621   : > { %v2886_v37 = vmul.f32 0.7978846, %v2884_v35  ;;  %v2885_v38 = vmul.f32 0.7978846, %v2883_v36  ;;  %v5079_v35 = vld [vmem:[#allocation13 + $0x20] sm:$0xff] }
 0x622   : > { %3575 = vmatpush.bf16.msrb.mxu2 %v5079_v35 }
 0x623   : > { %5246 = vtanh.f32 %v2885_v38 }
 0x624   : > { %5248 = vtanh.f32 %v2886_v37  ;;  %3407 = vmatpush.bf16.msrb.mxu0 %v5062_v49 }
 0x626   : > { %3576 = vmatpush.bf16.msrb.mxu2 %v5078_v50 }
 0x629   : > { %v5247_v39 = vpop.eup %5246 }
 0x62a   : > { %v5249_v40 = vpop.eup %5248  ;;  %v2889_v41 = vadd.f32 1.0, %v5247_v39  ;;  %3577 = vmatpush.bf16.msrb.mxu2 %v5077_v51 }
 0x62b   : > { %v2890_v42 = vadd.f32 1.0, %v5249_v40 }
 0x62c   : > { %v2891_v43 = vmul.f32 0.5, %v2889_v41 }
 0x62d   : > { %v2892_v44 = vmul.f32 0.5, %v2890_v42 }
 0x62e   : > { %v2893_v46 = vmul.f32 %v2891_v43, %v2875_v27  ;;  %v3242_v27 = vpop.f32.mrf.mxu2  ;;  %3578 = vmatpush.bf16.msrb.mxu2 %v5076_v53 }
 0x62f   : > { %v2894_v47 = vmul.f32 %v2892_v44, %v2876_v28  ;;  %v3243_v31 = vadd.f32 %v5214_v21, %v3242_v27 }
 0x631   : > { %v2895_v48 = vpack.c.bf16 %v2894_v47, %v2893_v46 }
 0x632   : > { %3579 = vmatpush.bf16.msrb.mxu2 %v5075_v55 }
 0x633   : > { %2969 = vmatmul.bf16.vlgmr.msrb.gmra.mxu3 %v2895_v48  ;;  %3048 = vmatmul.bf16.vlgmr.msra.gmra.mxu0 %v2895_v48 }
 0x634   : > { %3127 = vmatmul.bf16.vlgmr.msra.gmra.mxu1 %v2895_v48 }
 0x6b0   : > { %v3049_v3 = vpop.f32.mrf.mxu0 }
 0x6b1   : > { %v3128_v63 = vpop.f32.mrf.mxu1 }
 0x6b2   : > { %v3145_v9 = vrot.slane %v3128_v63, 2 }
 0x6b6   : > { %v2970_v1 = vpop.f32.mrf.mxu3 }
 0x6b7   : > { %v3135_v4 = vrot.slane %v2970_v1, 6 }
 0x6b8   : > { %v3051_v22 = vpop.f32.mrf.mxu0 }
 0x6b9   : > { %v3140_v6 = vsel %vm1629_vm10, 0.0, %v3135_v4  ;;  %v3130_v8 = vpop.f32.mrf.mxu1 }
 0x6ba   : > { %v3141_v10 = vadd.f32 %v3140_v6, %v3049_v3  ;;  %v3146_v11 = vrot.slane %v3130_v8, 2  ;;  %v5217_v6 = vld [vmem:[%s6043_s12] ss:$0 sm:$0xff]  ;;  %v3585_v8 = vlaneseq }
 0x6bc   : > { %v3147_v12 = vsel %vm1640_vm11, %v3145_v9, %v3146_v11  ;;  %v3150_v28 = vsel %vm1640_vm11, %v3146_v11, 0.0  ;;  %v3586_v11 = vand.u32 127, %v3585_v8 }
 0x6bd   : > { %v3151_v16 = vadd.f32 %v3147_v12, %v3141_v10  ;;  %v3523_v12 = vld [vmem:[%s6047_s16] sm:$0x1] }
 0x6be   : > { %v2972_v17 = vpop.f32.mrf.mxu3  ;;  %vm3587_vm12 = vcmp.lt.s32.totalorder %v3586_v11, 4 }
 0x6bf   : > { %v3136_v20 = vrot.slane %v2972_v17, 6  ;;  %v3158_v24 = vadd.f32 %v5215_v45, %v3151_v16 }
 0x6c1   : > { %v3137_v23 = vsel %vm1629_vm10, %v3135_v4, %v3136_v20  ;;  %v3245_v32 = vadd.f32 %v3241_v29, %v3158_v24 }
 0x6c2   : > { %v3142_v25 = vadd.f32 %v3137_v23, %v3051_v22 }
 0x6c3   : > { %v3247_v37 = vadd.f32 %v3245_v32, %v5915_v7  ;;  %v5061_v7 = vld [vmem:[#allocation10 + $0x10] sm:$0xff] }
 0x6c4   : > { %v3152_v30 = vadd.f32 %v3150_v28, %v3142_v25  ;;  %3408 = vmatpush.bf16.msrb.mxu0 %v5061_v7 }
 0x6c6   : > { %v3159_v33 = vadd.f32 %v5215_v45, %v3152_v30 }
 0x6c8   : > { %v3246_v36 = vadd.f32 %v3243_v31, %v3159_v33 }
 0x6ca   : > { %v3248_v38 = vadd.f32 %v3246_v36, %v5921_v15  ;;  %v5060_v15 = vld [vmem:[#allocation10 + $0x8] sm:$0xff] }
 0x6cb   : > { %3409 = vmatpush.bf16.msrb.mxu0 %v5060_v15 }
 0x6cc   : > { %v3249_v39 = vpack.c.bf16 %v3248_v38, %v3247_v37  ;;  %v3419_v40 = vmax.f32 %v3247_v37, %v3248_v38 }
 0x6ce   : > { %3326 = vmatmul.bf16.vlgmr.msra.gmra.mxu3 %v3249_v39  ;;  %v3420_v41 = vrot.slane %v3419_v40, 4 }
 0x6cf   : > { %3410 = vmatpush.bf16.msrb.mxu0 %v5059_v54 }
 0x6d0   : > { %v3421_v42 = vmax.f32 %v3419_v40, %v3420_v41 }
 0x6d2   : > { %v3422_v43 = vrot.slane %v3421_v42, 2 }
 0x6d4   : > { %v3423_v44 = vmax.f32 %v3421_v42, %v3422_v43 }
 0x6d6   : > { %v3424_v46 = vrot.slane %v3423_v44, 1 }
 0x6d8   : > { %v3425_v47 = vmax.f32 %v3423_v44, %v3424_v46 }
 0x6da   : > { %v3426_v48 = vpack.c.bf16 %v3425_v47, %v3425_v47 }
 0x6dc   : > { %3500 = vmatmul.bf16.vlgmr.msrb.gmra.mxu1 %v3426_v48 }
 0x751   : > { %v3327_v56 = vpop.f32.mrf.mxu3 }
 0x752   : > { %v3328_v59 = vadd.f32 %v5216_v57, %v3327_v56 }
 0x754   : > { %v3332_v0 = vmax.f32 %v3328_v59, 0.0 }
 0x759   : > { %v3329_v60 = vpop.f32.mrf.mxu3  ;;  %v3501_v61 = vpop.f32.mrf.mxu1 }
 0x75a   : > { %v3330_v62 = vadd.f32 %v5216_v57, %v3329_v60  ;;  %v3502_v63 = vadd.f32 %v3501_v61, %v3443_v58 }
 0x75c   : > { %v3333_v1 = vmax.f32 %v3330_v62, 0.0  ;;  %v3505_v2 = vmax.f32 %v3502_v63, 0.0 }
 0x75e   : > { %v3334_v3 = vpack.c.bf16 %v3333_v1, %v3332_v0  ;;  %v3506_v4 = vpack.c.bf16 %v3505_v2, %v3505_v2 }
 0x760   : > { %3411 = vmatmul.bf16.vlgmr.msrb.gmra.mxu0 %v3334_v3  ;;  %3580 = vmatmul.bf16.vlgmr.msrb.gmra.mxu2 %v3506_v4 }
 0x761   : > { %v3503_v5 = vpop.f32.mrf.mxu1 }
 0x7dd   : > { %v3412_v9 = vpop.f32.mrf.mxu0 }
 0x7de   : > { %v3413_v10 = vadd.f32 %v5217_v6, %v3412_v9 }
 0x7e0   : > { %3417 = vst [vmem:[%s688_s23] sm:$0xff] %v3413_v10 }
 0x7e3   : > { %v3581_v13 = vpop.f32.mrf.mxu2 }
 0x7e4   : > { %v3582_v14 = vadd.f32 %v3581_v13, %v3523_v12 }
 0x7e5   : > { %v3414_v16 = vpop.f32.mrf.mxu0 }
 0x7e6   : > { %v3415_v45 = vadd.f32 %v5217_v6, %v3414_v16  ;;  %v3588_v17 = vsel %vm3587_vm12, %v3582_v14, -1e+30 }
 0x7e7   : > { %v3589_v18 = vsel %vm1062_vm8, %v3588_v17, -inf }
 0x7e8   : > { %3418 = vst [vmem:[%s688_s23 + $0x8] sm:$0xff] %v3415_v45  ;;  %3590 = vmax.xlane.f32.xlu1 %v3589_v18  ;;  %s5484_s23 = scalar_lea.hbm %s6089_s24, 32 }
 0x7e9   : > { %p5486_p4 = scmp.lt.s32.totalorder %s5484_s23, %s5480_s27 }
 0x7eb   : > { %v3583_v19 = vpop.f32.mrf.mxu2  ;;  %p5487_p7 = por %p5486_p4, %p5485_p3 }
 0x7ed   : > { %p5488_p8 = pnand %p5487_p7, %p5483_p2 }
 0x85b   : > { %v3591_v20 = vpop.xlane.xlu1 %3590 }
 0x85c   : > { %v3592_v21 = vsub.f32 %v3588_v17, %v3591_v20 }
 0x85e   : > { %v3593_v22 = vmul.f32 1.442695, %v3592_v21 }
 0x860   : > { %5250 = vpow2.f32 %v3593_v22 }
 0x866   : > { %v5251_v23 = vpop.eup %5250 }
 0x867   : > { %v3595_v24 = vsel %vm1062_vm8, %v5251_v23, 0.0 }
 0x868   : > { %3596 = vadd.xlane.f32.xlu1 %v3595_v24 }
 0x869   : > { %5491 = shalt.err (!%p5488_p8)
}
 0x86a   : > { %s5587_s18 = smov 128   ;;  %s5588_s9 = smov 8  }
 0x86b   : > { %5112 = dma.vmem_to_hbm [thread:$0]  (%p5722_p5), %s3632_s20, 256, %s3634_s26, %s3615_s30, %s5587_s18, %s5587_s18, %s5588_s9  }
 0x86c   : > { %s6090_s17 = sld [smem:[#allocation36_spill]]  ;;  %s694_s20 = scalar_lea.vmem [#allocation15], %s5972_s22 }
 0x86d   : > { %s3647_s25 = sshll.u32 %s694_s20, 4  ;;  %s3620_s30 = scalar_lea.sflag [#allocation16], %s5972_s22  ;;  %s3648_s25 = int_to_ptr.vmem [resolvable:$true] %s3647_s25 }
 0x872   : > { %s3645_s29 = scalar_lea.hbm %s6090_s17, %s5705_s0  ;;  %s5512_s19 = scalar_lea.hbm %s6090_s17, 2 }
 0x873   : > { %s3649_s26 = sshll.u32 %s3645_s29, 4  ;;  %s3650_s26 = int_to_ptr.hbm [resolvable:$true] %s3649_s26 }
 0x874   : > { %s5506_s21 = sshra.s32 %s3650_s26, 4  ;;  %s5507_s21 = int_to_ptr.hbm [resolvable:$true] %s5506_s21 }
 0x875   : > { %s5508_s27 = scalar_lea.hbm %s5507_s21, 1  ;;  %p5513_p12 = scmp.lt.s32.totalorder %s5507_s21, %s6090_s17 }
 0x876   : > { %p5509_p9 = scmp.ne.s32.totalorder %s5507_s21, %s5508_s27  ;;  %p5514_p13 = scmp.lt.s32.totalorder %s5512_s19, %s5508_s27 }
 0x878   : > { %p5510_p10 = pnand %p5509_p9, %p5722_p5  ;;  %p5515_p0 = por %p5514_p13, %p5513_p12 }
 0x87a   : > { %p5511_p11 = pneg %p5510_p10 }
 0x87c   : > { %p5516_p1 = pnand %p5515_p0, %p5511_p11 }
 0x8db   : > { %v3597_v25 = vpop.xlane.xlu1 %3596 }
 0x8dc   : > { %5252 = vrcp.f32 %v3597_v25  ;;  %v3609_v28 = vand.u32 2147483648, %v3597_v25  ;;  %v3607_v30 = vand.u32 2147483647, %v3597_v25  ;;  %vm3603_vm14 = vweird.f32 %v3597_v25 }
 0x8de   : > { %v3610_v32 = vor.u32 1.1754944e-38, %v3609_v28  ;;  %vm3608_vm0 = vcmp.eq.f32.partialorder %v3607_v30, 8.507059e+37 }
 0x8e2   : > { %v5253_v52 = vpop.eup %5252 }
 0x8e3   : > { %v3599_v26 = vmul.f32 %v5253_v52, %v3597_v25  ;;  %vm3604_vm13 = vweird.f32 %v5253_v52 }
 0x8e4   : > { %vm3605_vm15 = vmor %vm3603_vm14, %vm3604_vm13 }
 0x8e5   : > { %v3600_v27 = vsub.f32 1.0, %v3599_v26 }
 0x8e7   : > { %v3601_v29 = vmul.f32 %v5253_v52, %v3600_v27 }
 0x8e9   : > { %v3602_v31 = vadd.f32 %v5253_v52, %v3601_v29 }
 0x8eb   : > { %v3606_v33 = vsel %vm3605_vm15, %v5253_v52, %v3602_v31 }
 0x8ec   : > { %v3611_v34 = vsel %vm3608_vm0, %v3610_v32, %v3606_v33 }
 0x8ed   : > { %v3612_v35 = vmul.f32 %v5251_v23, %v3611_v34 }
 0x8ef   : > { %3613 = vst [vmem:[%s694_s20] sm:$0x1] %v3612_v35 }
 0x8f0   : > { %5519 = shalt.err (!%p5516_p1)
}
 0x8f1   : > { %5113 = dma.vmem_to_hbm [thread:$0]  (%p5722_p5), %s3648_s25, 16, %s3650_s26, %s3620_s30  }
 0x8f2 PF: > { %s6091_s22 = sld [smem:[#allocation25_spill]] }
 0x8f3   : > { %s6092_s9 = sld [smem:[#allocation23_spill]] }
 0x8f8   : > { %p5159_p2 = scmp.ge.s32.totalorder %s6091_s22, 2 }
 0x8f9   : > { %s3661_s1 = sand.u32 1, %s6092_s9  }
 0x8fa   : > { %p5139_p3 = pnand %p5159_p2, %p5726_p6  ;;  %s3662_s29 = scalar_lea.sflag [#allocation4], %s3661_s1 }
 0x8fc   : > { %p5140_p4 = pneg %p5139_p3 }
 0x8fe   : > { %5553 = dma.done.wait (%p5140_p4), %s3662_s29, 256  }
 0x8ff   : > { %5555 = vsyncadd (%p5140_p4), %s3662_s29, 4294967040  ;;  %s3672_s20 = scalar_lea.sflag [#allocation16], %s3661_s1 }
 0x900   : > { %5557 = dma.done.wait (%p5140_p4), %s3672_s20, 16  }
 0x901   : > { %5559 = vsyncadd (%p5140_p4), %s3672_s20, 4294967280  ;;  %s6094_s30 = sld [smem:[#allocation26_spill]]  ;;  %s6097_s27 = smov %s5566_s28 }
 0x902   : > { %s6095_s21 = sld [smem:[#allocation24_spill]] }
 0x903   : > { %s6096_s29 = sld [smem:[#allocation27_spill]] }
 0x907   : > { %p36_p5 = scmp.ge.s32.totalorder %s6094_s30, 4  }
 0x908   : > { %s6098_s28 = smov %s6095_s21 }
 0x909   :  { %38 = sbr.rel (!%p36_p5) target bundleno = 18 (0x12), region = 199 }
 0x90e   :  { %3677 = vsyncpa [#allocation3], 1 }
 0x90f   :  { %3679 = vsyncpa [#allocation3 + $0x1], 1 }
 0x910   :  { %3680 = vsyncpa [#allocation6], 1 }
 0x911   :  { %3681 = vsyncpa [#allocation9], 1 }
 0x912   :  { %3682 = vsyncpa [#allocation12], 1 }
 0x913   :  { %3683 = vsyncpa [#allocation4], 1 }
 0x914   :  { %3685 = vsyncpa [#allocation4 + $0x1], 1 }
 0x915   :  { %3686 = vsyncpa [#allocation16], 1 }
 0x916   :  { %3688 = vsyncpa [#allocation16 + $0x1], 1 }

</bundles_post_ra>
